<compile_context>
chip_gen: v6e
topology: v6e:2x2x1
jax: 0.10.0
libtpu: 0.0.40
codegen_flags: <defaults>
</compile_context>

<pallas_src>
import functools

import jax
import jax.numpy as jnp
from jax.experimental import pallas as pl
from jax.experimental.pallas import tpu as pltpu

_LANES = 128


def _round_up(x, m):
    return (x + m - 1) // m * m


def pack_params(params):
    """Pack weights into one lane-dense bf16 slab and biases into one f32 slab.

    Every interior weight is a zero-padded (128, 128) tile so every matmul consumes and
    produces full 128-lane activations.  w20 and waL share a tile (fused matmul on h1);
    waG / ba0 / wa1 are column/row shifted so the attention branch reads its own lanes.
    Returns (wslab_bf16, bslab_f32, w_meta, b_meta) with static Python metas
    name -> (row_offset, rows_used) / row used for free static slices in-kernel.
    """
    D, M10 = params["w10"].shape
    H1 = params["w11"].shape[1]
    M20 = params["w20"].shape[1]
    H2 = params["w21"].shape[1]
    A0 = params["waL"].shape[1]
    A1 = params["wa1"].shape[1]
    S, M30 = params["w3s"].shape
    M31 = params["w31"].shape[1]
    out_dim = params["w32"].shape[1]
    col_aL = M20                        # attention-local columns sit right after w20's
    assert max(M10, H1, M20, H2, A0, A1, M30, M31, out_dim) <= _LANES
    assert col_aL + A0 <= _LANES
    # TODO(synk): configs with hidden widths > 128 would need multi-tile (K>128) packing.

    K = _LANES
    tiles = [
        # name, tile_rows, rows_used_in_dot, [(array, row0, col0), ...]
        ("w10",     _round_up(D, 16), D, [(params["w10"], 0, 0)]),
        ("w11",     K, K, [(params["w11"], 0, 0)]),
        ("w20_waL", K, K, [(params["w20"], 0, 0), (params["waL"], 0, col_aL)]),
        ("w21",     K, K, [(params["w21"], 0, 0)]),
        ("waG",     K, K, [(params["waG"], 0, col_aL)]),
        ("wa1",     K, K, [(params["wa1"], col_aL, 0)]),
        ("wa2",     K, K, [(params["wa2"], 0, 0)]),
        ("w3s",     _round_up(S, 16), S, [(params["w3s"], 0, 0)]),
        ("w3f",     K, K, [(params["w3f"], 0, 0)]),
        ("w31",     K, K, [(params["w31"], 0, 0)]),
        ("w32",     K, K, [(params["w32"], 0, 0)]),
    ]
    total = sum(t[1] for t in tiles)
    wslab = jnp.zeros((total, _LANES), jnp.bfloat16)
    w_meta = {}
    off = 0
    for name, rows, used, places in tiles:
        w_meta[name] = (off, used)
        for arr, r0, c0 in places:
            r, c = arr.shape
            wslab = wslab.at[off + r0:off + r0 + r, c0:c0 + c].set(
                arr.astype(jnp.bfloat16))
        off += rows

    biases = [
        ("b10", params["b10"], 0), ("b11", params["b11"], 0),
        ("b20", params["b20"], 0), ("b21", params["b21"], 0),
        ("ba0", params["ba0"], col_aL), ("ba1", params["ba1"], 0),
        ("ba2", params["ba2"], 0),
        ("b30", params["b30"], 0), ("b31", params["b31"], 0), ("b32", params["b32"], 0),
    ]
    brows = _round_up(len(biases), 8)
    bslab = jnp.zeros((brows, _LANES), jnp.float32)
    b_meta = {}
    for i, (name, b, c0) in enumerate(biases):
        b = b.reshape(1, -1).astype(jnp.float32)
        b_meta[name] = i
        bslab = bslab.at[i:i + 1, c0:c0 + b.shape[1]].set(b)
    return wslab, bslab, w_meta, b_meta


def _value_kernel(N, TB, S, out_dim, w_meta, b_meta,
                  state_ref, w_ref, b_ref, out_ref):
    f32, bf16 = jnp.float32, jnp.bfloat16

    def W(name):
        o, r = w_meta[name]
        return w_ref[o:o + r, :]                      # (r, 128) bf16, static slice

    def Bv(name):
        i = b_meta[name]
        return b_ref[i:i + 1, :]                      # (1, 128) f32

    def dot16(x, w):                                  # bf16 MXU, f32 accumulate
        return jnp.dot(x.astype(bf16), w, preferred_element_type=f32)

    def dot32(x, w):                                  # f32 matmul for raw-input layers
        return jnp.dot(x, w.astype(f32), preferred_element_type=f32)

    R = N * TB
    x_bn = state_ref[...]                             # (TB, N, D) batch-major block
    # One small in-kernel relayout to an agent-major slab (row = n*TB + b).  All later
    # (R, C) <-> (N, TB, C) reshapes are then free views (TB is sublane-aligned) and the
    # per-batch reductions over agents are plain axis-0 reductions.
    agents = [x_bn[:, n, :] for n in range(N)]
    x = jnp.concatenate(agents, axis=0)               # (R, D)
    self_state = agents[0][:, :S]                     # (TB, S) == state[:, 0, :S]

    # ---- mlp1 (last_relu=True); raw 13-wide input stays f32 on the MXU ----
    h = jnp.maximum(dot32(x, W("w10")) + Bv("b10"), 0.0)        # (R,128)
    h1 = jnp.maximum(dot16(h, W("w11")) + Bv("b11"), 0.0)       # (R,128): cols 0..H1-1

    # ---- fused matmul: w20 (cols 0..) and waL (cols col_aL..) share LHS h1 ----
    fused = dot16(h1, W("w20_waL"))                             # (R,128)

    # mlp2 tail (no ReLU on last layer).  The attention-local columns carry garbage here
    # but are killed by the zero rows of the padded w21 tile.
    h2 = jnp.maximum(fused + Bv("b20"), 0.0)
    feat = dot16(h2, W("w21")) + Bv("b21")                      # (R,128): cols 0..H2-1

    # ---- global state: per-batch mean of mlp1 output over agents ----
    g = jnp.mean(h1.reshape(N, TB, _LANES), axis=0)             # (TB,128)
    gG = dot16(g, W("waG"))                                     # (TB,128): cols col_aL..

    # attention MLP on cat([h1, broadcast(g)]); concat folded into w20_waL / waG columns
    a0 = jnp.maximum(fused.reshape(N, TB, _LANES) + gG[None, :, :] + Bv("ba0"), 0.0)
    a0 = a0.reshape(R, _LANES)
    a1 = jnp.maximum(dot16(a0, W("wa1")) + Bv("ba1"), 0.0)
    scores = (dot16(a1, W("wa2")) + Bv("ba2"))[:, 0:1]          # (R,1)

    # masked-exp softmax over agents (f32, no max-subtraction -- matches the torch code).
    # NOTE: the (scores != 0) padding mask relies on exact zeros; bf16 matmuls can in
    # principle perturb an exact-zero score (same fragility as the reference).
    s3 = scores.reshape(N, TB, 1)
    e = jnp.exp(s3) * (s3 != 0.0).astype(f32)
    denom = jnp.sum(e, axis=0)                                  # (TB,1)
    denom = denom + (denom == 0.0).astype(f32)                  # guard padded batch cols
    wgt = e * pl.reciprocal(denom, approx=True)[None, :, :]     # (N,TB,1), EUP divide
    # TODO(synk): self.attention_weights (host-side numpy copy of weights[0]) is a debug
    # side-effect of the torch module and is not reproduced.

    wf = jnp.sum(wgt * feat.reshape(N, TB, _LANES), axis=0)     # (TB,128): cols 0..H2-1

    # ---- mlp3 on cat([self_state, weighted_feature]); concat folded into w3s/w3f ----
    v = jnp.maximum(dot32(self_state, W("w3s")) + dot16(wf, W("w3f")) + Bv("b30"), 0.0)
    v = jnp.maximum(dot16(v, W("w31")) + Bv("b31"), 0.0)
    v = dot16(v, W("w32")) + Bv("b32")                          # (TB,128): cols 0..out-1
    # small transpose (TB,out_dim) -> lane-dense (out_dim, TB) block (batch on lanes)
    out_ref[0] = jnp.transpose(v[:, :out_dim])


def value_network_forward(state, params, self_state_dim, *, tile_b=None):
    """state: (B, N, D) float32 -> value: (B, out_dim) float32."""
    B, N, D = state.shape
    out_dim = params["w32"].shape[1]
    wslab, bslab, w_meta, b_meta = pack_params(params)

    if tile_b is None:
        # Small batches: no padded-row waste.  Large batches: 256-aligned tiles so the
        # agent-flattened slab (N*256 rows) fills the MXU row granule and multiple tiles
        # exist for the parallel grid axis (v7x second TensorCore).
        tile_b = min(256, _round_up(max(B, 1), 8))
    assert tile_b % 8 == 0, "tile_b must be a multiple of 8 (sublane alignment)"

    b_pad = _round_up(max(B, 1), tile_b)
    num_tiles = b_pad // tile_b
    state_p = state.astype(jnp.float32)
    if b_pad != B:
        state_p = jnp.pad(state_p, ((0, b_pad - B), (0, 0), (0, 0)))

    kernel = functools.partial(_value_kernel, N, tile_b, self_state_dim, out_dim,
                               w_meta, b_meta)
    grid_spec = pltpu.PrefetchScalarGridSpec(
        num_scalar_prefetch=0,
        grid=(num_tiles,),
        in_specs=[
            pl.BlockSpec((tile_b, N, D), lambda t: (t, 0, 0)),   # batch-major state tile
            pl.BlockSpec(wslab.shape, lambda t: (0, 0)),         # packed weights (resident)
            pl.BlockSpec(bslab.shape, lambda t: (0, 0)),         # packed biases  (resident)
        ],
        out_specs=pl.BlockSpec((1, out_dim, tile_b), lambda t: (t, 0, 0)),
    )
    cp = dict(dimension_semantics=("parallel",))
    if tile_b > 256:
        cp["vmem_limit_bytes"] = 64 * 1024 * 1024   # big tiles on v5e's 16 MiB default
    out = pl.pallas_call(
        kernel,
        grid_spec=grid_spec,
        out_shape=jax.ShapeDtypeStruct((num_tiles, out_dim, tile_b), jnp.float32),
        compiler_params=pltpu.CompilerParams(**cp),
    )(state_p, wslab, bslab)

    out = jnp.transpose(out, (0, 2, 1)).reshape(b_pad, out_dim)
    return out[:B]


def value_network_reference(state, params, self_state_dim):
    """Pure-JAX f32 reference mirroring the PyTorch forward (for a sanity check)."""
    B, N, D = state.shape
    x = state.reshape(B * N, D)
    h = jax.nn.relu(x @ params["w10"] + params["b10"])
    h1 = jax.nn.relu(h @ params["w11"] + params["b11"])
    h2 = jax.nn.relu(h1 @ params["w20"] + params["b20"])
    feat = h2 @ params["w21"] + params["b21"]
    g = jnp.mean(h1.reshape(B, N, -1), axis=1)                       # (B, H1)
    g_rows = jnp.repeat(g, N, axis=0)                                # broadcast to agents
    a = jax.nn.relu(h1 @ params["waL"] + g_rows @ params["waG"] + params["ba0"])
    a = jax.nn.relu(a @ params["wa1"] + params["ba1"])
    scores = (a @ params["wa2"] + params["ba2"]).reshape(B, N)
    scores_exp = jnp.exp(scores) * (scores != 0.0).astype(jnp.float32)
    weights = scores_exp / jnp.sum(scores_exp, axis=1, keepdims=True)
    wf = jnp.sum(weights[:, :, None] * feat.reshape(B, N, -1), axis=1)
    self_state = state[:, 0, :self_state_dim]
    v = jax.nn.relu(self_state @ params["w3s"] + wf @ params["w3f"] + params["b30"])
    v = jax.nn.relu(v @ params["w31"] + params["b31"])
    return v @ params["w32"] + params["b32"]


def _linear(key, din, dout, scale=0.1):
    kw, kb = jax.random.split(key)
    w = scale * jax.random.normal(kw, (din, dout), jnp.float32)
    b = scale * jax.random.normal(kb, (1, dout), jnp.float32)
    return w, b


def init_params(key, input_dim, self_state_dim, mlp1_dims, mlp2_dims, mlp3_dims,
                attention_dims):
    """Deterministic synthetic parameters (shapes follow the PyTorch __init__)."""
    keys = iter(jax.random.split(key, 16))
    p = {}
    p["w10"], p["b10"] = _linear(next(keys), input_dim, mlp1_dims[0])
    p["w11"], p["b11"] = _linear(next(keys), mlp1_dims[0], mlp1_dims[1])
    p["w20"], p["b20"] = _linear(next(keys), mlp1_dims[1], mlp2_dims[0])
    p["w21"], p["b21"] = _linear(next(keys), mlp2_dims[0], mlp2_dims[1])
    H1 = mlp1_dims[-1]
    wa0, p["ba0"] = _linear(next(keys), 2 * H1, attention_dims[0])
    p["waL"], p["waG"] = wa0[:H1], wa0[H1:]                 # concat split (local/global)
    p["wa1"], p["ba1"] = _linear(next(keys), attention_dims[0], attention_dims[1])
    p["wa2"], p["ba2"] = _linear(next(keys), attention_dims[1], attention_dims[2])
    w30, p["b30"] = _linear(next(keys), self_state_dim + mlp2_dims[-1], mlp3_dims[0])
    p["w3s"], p["w3f"] = w30[:self_state_dim], w30[self_state_dim:]  # concat split
    p["w31"], p["b31"] = _linear(next(keys), mlp3_dims[0], mlp3_dims[1])
    p["w32"], p["b32"] = _linear(next(keys), mlp3_dims[1], mlp3_dims[2])
    return p


if __name__ == "__main__":
    key = jax.random.PRNGKey(0)
    k_param, k_state, k_state2 = jax.random.split(key, 3)

    # Small shapes consistent with the module's forward (CrowdNav-style config, shrunk).
    B, N = 2, 5                       # batch, number of agents
    input_dim, self_state_dim = 13, 6
    mlp1_dims = [64, 32]
    mlp2_dims = [32, 32]
    attention_dims = [32, 32, 1]
    mlp3_dims = [64, 32, 1]
    # with_global_state = True (standard configuration)
    # TODO(synk): with_global_state=False branch is not implemented (module exercised with True).

    params = init_params(k_param, input_dim, self_state_dim, mlp1_dims, mlp2_dims,
                         mlp3_dims, attention_dims)

    # --- small batch (single tile, tile_b = round_up(B, 8) = 8, no padded-row waste) ---
    state = jax.random.normal(k_state, (B, N, input_dim), jnp.float32)
    value = jax.block_until_ready(value_network_forward(state, params, self_state_dim))
    assert value.shape == (B, mlp3_dims[-1])
    assert bool(jnp.all(jnp.isfinite(value)))
    ref = value_network_reference(state, params, self_state_dim)
    assert bool(jnp.allclose(value, ref, atol=2e-2, rtol=2e-2)), (
        f"small-batch mismatch: max abs err {float(jnp.max(jnp.abs(value - ref)))}")

    # --- larger batch exercising the multi-tile parallel grid + batch-padding path ---
    B2 = 300
    state2 = jax.random.normal(k_state2, (B2, N, input_dim), jnp.float32)
    value2 = jax.block_until_ready(value_network_forward(state2, params, self_state_dim))
    assert value2.shape == (B2, mlp3_dims[-1])
    ref2 = value_network_reference(state2, params, self_state_dim)
    assert bool(jnp.allclose(value2, ref2, atol=2e-2, rtol=2e-2)), (
        f"big-batch mismatch: max abs err {float(jnp.max(jnp.abs(value2 - ref2)))}")

    print("KERNEL_OK")
</pallas_src>

<mosaic_0001>
module attributes {stable_mosaic.version = 11 : i64} {
  func.func @_value_kernel(%arg0: i32, %arg1: memref<8x5x13xf32, #tpu.memory_space<vmem>>, %arg2: memref<1184x128xbf16, #tpu.memory_space<vmem>>, %arg3: memref<16x128xf32, #tpu.memory_space<vmem>>, %arg4: memref<1x1x8xf32, #tpu.memory_space<vmem>>) attributes {dimension_semantics = [#tpu.dimension_semantics<parallel>], iteration_bounds = array<i64: 1>, scalar_prefetch = 0 : i64, scratch_operands = 0 : i64, tpu.core_type = #tpu.core_type<tc>, window_params = [{transform_indices = @transform_0, window_bounds = array<i64: 8, 5, 13>}, {pipeline_mode = #tpu.pipeline_mode<synchronous>, transform_indices = @transform_1, window_bounds = array<i64: 1184, 128>}, {pipeline_mode = #tpu.pipeline_mode<synchronous>, transform_indices = @transform_2, window_bounds = array<i64: 16, 128>}, {transform_indices = @transform_3, window_bounds = array<i64: 1, 1, 8>}]} {
    %c0 = arith.constant 0 : index
    %c0_0 = arith.constant 0 : index
    %c0_1 = arith.constant 0 : index
    %0 = vector.load %arg1[%c0, %c0_0, %c0_1] : memref<8x5x13xf32, #tpu.memory_space<vmem>>, vector<8x5x13xf32>
    %1 = vector.extract_strided_slice %0 {offsets = [0, 0, 0], sizes = [8, 1, 13], strides = [1, 1, 1]} : vector<8x5x13xf32> to vector<8x1x13xf32>
    %2 = vector.shape_cast %1 : vector<8x1x13xf32> to vector<8x13xf32>
    %3 = vector.extract_strided_slice %0 {offsets = [0, 1, 0], sizes = [8, 1, 13], strides = [1, 1, 1]} : vector<8x5x13xf32> to vector<8x1x13xf32>
    %4 = vector.shape_cast %3 : vector<8x1x13xf32> to vector<8x13xf32>
    %5 = vector.extract_strided_slice %0 {offsets = [0, 2, 0], sizes = [8, 1, 13], strides = [1, 1, 1]} : vector<8x5x13xf32> to vector<8x1x13xf32>
    %6 = vector.shape_cast %5 : vector<8x1x13xf32> to vector<8x13xf32>
    %7 = vector.extract_strided_slice %0 {offsets = [0, 3, 0], sizes = [8, 1, 13], strides = [1, 1, 1]} : vector<8x5x13xf32> to vector<8x1x13xf32>
    %8 = vector.shape_cast %7 : vector<8x1x13xf32> to vector<8x13xf32>
    %9 = vector.extract_strided_slice %0 {offsets = [0, 4, 0], sizes = [8, 1, 13], strides = [1, 1, 1]} : vector<8x5x13xf32> to vector<8x1x13xf32>
    %10 = vector.shape_cast %9 : vector<8x1x13xf32> to vector<8x13xf32>
    %11 = tpu.concatenate %2, %4, %6, %8, %10 in 0 : vector<8x13xf32>, vector<8x13xf32>, vector<8x13xf32>, vector<8x13xf32>, vector<8x13xf32> -> vector<40x13xf32>
    %12 = vector.extract_strided_slice %2 {offsets = [0, 0], sizes = [8, 6], strides = [1, 1]} : vector<8x13xf32> to vector<8x6xf32>
    %c0_2 = arith.constant 0 : index
    %c0_3 = arith.constant 0 : index
    %13 = vector.load %arg2[%c0_2, %c0_3] : memref<1184x128xbf16, #tpu.memory_space<vmem>>, vector<13x128xbf16>
    %14 = arith.extf %13 : vector<13x128xbf16> to vector<13x128xf32>
    %cst = arith.constant dense<0.000000e+00> : vector<40x128xf32>
    %15 = tpu.matmul %11, %14, %cst {dimension_numbers = #tpu.dot_dimension_numbers<[1], [0], [0], [1], [0, 0, 1, 1], [], []>} : vector<40x13xf32>, vector<13x128xf32>, vector<40x128xf32> -> vector<40x128xf32>
    %c0_4 = arith.constant 0 : index
    %c0_5 = arith.constant 0 : index
    %16 = vector.load %arg3[%c0_4, %c0_5] : memref<16x128xf32, #tpu.memory_space<vmem>>, vector<1x128xf32>
    %17 = vector.broadcast %16 : vector<1x128xf32> to vector<40x128xf32>
    %18 = arith.addf %15, %17 : vector<40x128xf32>
    %cst_6 = arith.constant 0.000000e+00 : f32
    %19 = vector.broadcast %cst_6 : f32 to vector<40x128xf32>
    %20 = arith.maximumf %18, %19 : vector<40x128xf32>
    %c16 = arith.constant 16 : index
    %c0_7 = arith.constant 0 : index
    %21 = vector.load %arg2[%c16, %c0_7] : memref<1184x128xbf16, #tpu.memory_space<vmem>>, vector<128x128xbf16>
    %22 = arith.truncf %20 : vector<40x128xf32> to vector<40x128xbf16>
    %cst_8 = arith.constant dense<0.000000e+00> : vector<40x128xf32>
    %23 = tpu.matmul %22, %21, %cst_8 {dimension_numbers = #tpu.dot_dimension_numbers<[1], [0], [0], [1], [0, 0, 1, 1], [], []>} : vector<40x128xbf16>, vector<128x128xbf16>, vector<40x128xf32> -> vector<40x128xf32>
    %c1 = arith.constant 1 : index
    %c0_9 = arith.constant 0 : index
    %24 = vector.load %arg3[%c1, %c0_9] : memref<16x128xf32, #tpu.memory_space<vmem>>, vector<1x128xf32>
    %25 = vector.broadcast %24 : vector<1x128xf32> to vector<40x128xf32>
    %26 = arith.addf %23, %25 : vector<40x128xf32>
    %cst_10 = arith.constant 0.000000e+00 : f32
    %27 = vector.broadcast %cst_10 : f32 to vector<40x128xf32>
    %28 = arith.maximumf %26, %27 : vector<40x128xf32>
    %c144 = arith.constant 144 : index
    %c0_11 = arith.constant 0 : index
    %29 = vector.load %arg2[%c144, %c0_11] : memref<1184x128xbf16, #tpu.memory_space<vmem>>, vector<128x128xbf16>
    %30 = arith.truncf %28 : vector<40x128xf32> to vector<40x128xbf16>
    %cst_12 = arith.constant dense<0.000000e+00> : vector<40x128xf32>
    %31 = tpu.matmul %30, %29, %cst_12 {dimension_numbers = #tpu.dot_dimension_numbers<[1], [0], [0], [1], [0, 0, 1, 1], [], []>} : vector<40x128xbf16>, vector<128x128xbf16>, vector<40x128xf32> -> vector<40x128xf32>
    %c2 = arith.constant 2 : index
    %c0_13 = arith.constant 0 : index
    %32 = vector.load %arg3[%c2, %c0_13] : memref<16x128xf32, #tpu.memory_space<vmem>>, vector<1x128xf32>
    %33 = vector.broadcast %32 : vector<1x128xf32> to vector<40x128xf32>
    %34 = arith.addf %31, %33 : vector<40x128xf32>
    %cst_14 = arith.constant 0.000000e+00 : f32
    %35 = vector.broadcast %cst_14 : f32 to vector<40x128xf32>
    %36 = arith.maximumf %34, %35 : vector<40x128xf32>
    %c272 = arith.constant 272 : index
    %c0_15 = arith.constant 0 : index
    %37 = vector.load %arg2[%c272, %c0_15] : memref<1184x128xbf16, #tpu.memory_space<vmem>>, vector<128x128xbf16>
    %38 = arith.truncf %36 : vector<40x128xf32> to vector<40x128xbf16>
    %cst_16 = arith.constant dense<0.000000e+00> : vector<40x128xf32>
    %39 = tpu.matmul %38, %37, %cst_16 {dimension_numbers = #tpu.dot_dimension_numbers<[1], [0], [0], [1], [0, 0, 1, 1], [], []>} : vector<40x128xbf16>, vector<128x128xbf16>, vector<40x128xf32> -> vector<40x128xf32>
    %c3 = arith.constant 3 : index
    %c0_17 = arith.constant 0 : index
    %40 = vector.load %arg3[%c3, %c0_17] : memref<16x128xf32, #tpu.memory_space<vmem>>, vector<1x128xf32>
    %41 = vector.broadcast %40 : vector<1x128xf32> to vector<40x128xf32>
    %42 = arith.addf %39, %41 : vector<40x128xf32>
    %43 = vector.shape_cast %28 : vector<40x128xf32> to vector<5x8x128xf32>
    %cst_18 = arith.constant dense<0.000000e+00> : vector<8x128xf32>
    %44 = vector.multi_reduction <add>, %43, %cst_18 [0] : vector<5x8x128xf32> to vector<8x128xf32>
    %cst_19 = arith.constant 5.000000e+00 : f32
    %45 = vector.broadcast %cst_19 : f32 to vector<8x128xf32>
    %46 = arith.divf %44, %45 : vector<8x128xf32>
    %c400 = arith.constant 400 : index
    %c0_20 = arith.constant 0 : index
    %47 = vector.load %arg2[%c400, %c0_20] : memref<1184x128xbf16, #tpu.memory_space<vmem>>, vector<128x128xbf16>
    %48 = arith.truncf %46 : vector<8x128xf32> to vector<8x128xbf16>
    %cst_21 = arith.constant dense<0.000000e+00> : vector<8x128xf32>
    %49 = tpu.matmul %48, %47, %cst_21 {dimension_numbers = #tpu.dot_dimension_numbers<[1], [0], [0], [1], [0, 0, 1, 1], [], []>} : vector<8x128xbf16>, vector<128x128xbf16>, vector<8x128xf32> -> vector<8x128xf32>
    %50 = vector.shape_cast %31 : vector<40x128xf32> to vector<5x8x128xf32>
    %51 = vector.shape_cast %49 : vector<8x128xf32> to vector<1x8x128xf32>
    %52 = vector.broadcast %51 : vector<1x8x128xf32> to vector<5x8x128xf32>
    %53 = arith.addf %50, %52 : vector<5x8x128xf32>
    %c4 = arith.constant 4 : index
    %c0_22 = arith.constant 0 : index
    %54 = vector.load %arg3[%c4, %c0_22] : memref<16x128xf32, #tpu.memory_space<vmem>>, vector<1x128xf32>
    %55 = vector.shape_cast %54 : vector<1x128xf32> to vector<1x1x128xf32>
    %56 = vector.broadcast %55 : vector<1x1x128xf32> to vector<5x8x128xf32>
    %57 = arith.addf %53, %56 : vector<5x8x128xf32>
    %cst_23 = arith.constant 0.000000e+00 : f32
    %58 = vector.broadcast %cst_23 : f32 to vector<5x8x128xf32>
    %59 = arith.maximumf %57, %58 : vector<5x8x128xf32>
    %60 = vector.shape_cast %59 : vector<5x8x128xf32> to vector<40x128xf32>
    %c528 = arith.constant 528 : index
    %c0_24 = arith.constant 0 : index
    %61 = vector.load %arg2[%c528, %c0_24] : memref<1184x128xbf16, #tpu.memory_space<vmem>>, vector<128x128xbf16>
    %62 = arith.truncf %60 : vector<40x128xf32> to vector<40x128xbf16>
    %cst_25 = arith.constant dense<0.000000e+00> : vector<40x128xf32>
    %63 = tpu.matmul %62, %61, %cst_25 {dimension_numbers = #tpu.dot_dimension_numbers<[1], [0], [0], [1], [0, 0, 1, 1], [], []>} : vector<40x128xbf16>, vector<128x128xbf16>, vector<40x128xf32> -> vector<40x128xf32>
    %c5 = arith.constant 5 : index
    %c0_26 = arith.constant 0 : index
    %64 = vector.load %arg3[%c5, %c0_26] : memref<16x128xf32, #tpu.memory_space<vmem>>, vector<1x128xf32>
    %65 = vector.broadcast %64 : vector<1x128xf32> to vector<40x128xf32>
    %66 = arith.addf %63, %65 : vector<40x128xf32>
    %cst_27 = arith.constant 0.000000e+00 : f32
    %67 = vector.broadcast %cst_27 : f32 to vector<40x128xf32>
    %68 = arith.maximumf %66, %67 : vector<40x128xf32>
    %c656 = arith.constant 656 : index
    %c0_28 = arith.constant 0 : index
    %69 = vector.load %arg2[%c656, %c0_28] : memref<1184x128xbf16, #tpu.memory_space<vmem>>, vector<128x128xbf16>
    %70 = arith.truncf %68 : vector<40x128xf32> to vector<40x128xbf16>
    %cst_29 = arith.constant dense<0.000000e+00> : vector<40x128xf32>
    %71 = tpu.matmul %70, %69, %cst_29 {dimension_numbers = #tpu.dot_dimension_numbers<[1], [0], [0], [1], [0, 0, 1, 1], [], []>} : vector<40x128xbf16>, vector<128x128xbf16>, vector<40x128xf32> -> vector<40x128xf32>
    %c6 = arith.constant 6 : index
    %c0_30 = arith.constant 0 : index
    %72 = vector.load %arg3[%c6, %c0_30] : memref<16x128xf32, #tpu.memory_space<vmem>>, vector<1x128xf32>
    %73 = vector.broadcast %72 : vector<1x128xf32> to vector<40x128xf32>
    %74 = arith.addf %71, %73 : vector<40x128xf32>
    %75 = vector.extract_strided_slice %74 {offsets = [0, 0], sizes = [40, 1], strides = [1, 1]} : vector<40x128xf32> to vector<40x1xf32>
    %76 = vector.shape_cast %75 : vector<40x1xf32> to vector<5x8x1xf32>
    %77 = math.exp %76 : vector<5x8x1xf32>
    %cst_31 = arith.constant 0.000000e+00 : f32
    %78 = vector.broadcast %cst_31 : f32 to vector<5x8x1xf32>
    %79 = arith.cmpf one, %76, %78 : vector<5x8x1xf32>
    %80 = arith.extui %79 : vector<5x8x1xi1> to vector<5x8x1xi32>
    %81 = arith.sitofp %80 : vector<5x8x1xi32> to vector<5x8x1xf32>
    %82 = arith.mulf %77, %81 : vector<5x8x1xf32>
    %cst_32 = arith.constant dense<0.000000e+00> : vector<8x1xf32>
    %83 = vector.multi_reduction <add>, %82, %cst_32 [0] : vector<5x8x1xf32> to vector<8x1xf32>
    %cst_33 = arith.constant 0.000000e+00 : f32
    %84 = vector.broadcast %cst_33 : f32 to vector<8x1xf32>
    %85 = arith.cmpf oeq, %83, %84 : vector<8x1xf32>
    %86 = arith.extui %85 : vector<8x1xi1> to vector<8x1xi32>
    %87 = arith.sitofp %86 : vector<8x1xi32> to vector<8x1xf32>
    %88 = arith.addf %83, %87 : vector<8x1xf32>
    %89 = tpu.reciprocal %88 {approx = true} : vector<8x1xf32> -> vector<8x1xf32>
    %90 = vector.shape_cast %89 : vector<8x1xf32> to vector<1x8x1xf32>
    %91 = vector.broadcast %90 : vector<1x8x1xf32> to vector<5x8x1xf32>
    %92 = arith.mulf %82, %91 : vector<5x8x1xf32>
    %93 = vector.shape_cast %42 : vector<40x128xf32> to vector<5x8x128xf32>
    %94 = vector.broadcast %92 : vector<5x8x1xf32> to vector<5x8x128xf32>
    %95 = arith.mulf %94, %93 : vector<5x8x128xf32>
    %cst_34 = arith.constant dense<0.000000e+00> : vector<8x128xf32>
    %96 = vector.multi_reduction <add>, %95, %cst_34 [0] : vector<5x8x128xf32> to vector<8x128xf32>
    %c784 = arith.constant 784 : index
    %c0_35 = arith.constant 0 : index
    %97 = vector.load %arg2[%c784, %c0_35] : memref<1184x128xbf16, #tpu.memory_space<vmem>>, vector<6x128xbf16>
    %98 = arith.extf %97 : vector<6x128xbf16> to vector<6x128xf32>
    %cst_36 = arith.constant dense<0.000000e+00> : vector<8x128xf32>
    %99 = tpu.matmul %12, %98, %cst_36 {dimension_numbers = #tpu.dot_dimension_numbers<[1], [0], [0], [1], [0, 0, 1, 1], [], []>} : vector<8x6xf32>, vector<6x128xf32>, vector<8x128xf32> -> vector<8x128xf32>
    %c800 = arith.constant 800 : index
    %c0_37 = arith.constant 0 : index
    %100 = vector.load %arg2[%c800, %c0_37] : memref<1184x128xbf16, #tpu.memory_space<vmem>>, vector<128x128xbf16>
    %101 = arith.truncf %96 : vector<8x128xf32> to vector<8x128xbf16>
    %cst_38 = arith.constant dense<0.000000e+00> : vector<8x128xf32>
    %102 = tpu.matmul %101, %100, %cst_38 {dimension_numbers = #tpu.dot_dimension_numbers<[1], [0], [0], [1], [0, 0, 1, 1], [], []>} : vector<8x128xbf16>, vector<128x128xbf16>, vector<8x128xf32> -> vector<8x128xf32>
    %103 = arith.addf %99, %102 : vector<8x128xf32>
    %c7 = arith.constant 7 : index
    %c0_39 = arith.constant 0 : index
    %104 = vector.load %arg3[%c7, %c0_39] : memref<16x128xf32, #tpu.memory_space<vmem>>, vector<1x128xf32>
    %105 = vector.broadcast %104 : vector<1x128xf32> to vector<8x128xf32>
    %106 = arith.addf %103, %105 : vector<8x128xf32>
    %cst_40 = arith.constant 0.000000e+00 : f32
    %107 = vector.broadcast %cst_40 : f32 to vector<8x128xf32>
    %108 = arith.maximumf %106, %107 : vector<8x128xf32>
    %c928 = arith.constant 928 : index
    %c0_41 = arith.constant 0 : index
    %109 = vector.load %arg2[%c928, %c0_41] : memref<1184x128xbf16, #tpu.memory_space<vmem>>, vector<128x128xbf16>
    %110 = arith.truncf %108 : vector<8x128xf32> to vector<8x128xbf16>
    %cst_42 = arith.constant dense<0.000000e+00> : vector<8x128xf32>
    %111 = tpu.matmul %110, %109, %cst_42 {dimension_numbers = #tpu.dot_dimension_numbers<[1], [0], [0], [1], [0, 0, 1, 1], [], []>} : vector<8x128xbf16>, vector<128x128xbf16>, vector<8x128xf32> -> vector<8x128xf32>
    %c8 = arith.constant 8 : index
    %c0_43 = arith.constant 0 : index
    %112 = vector.load %arg3[%c8, %c0_43] : memref<16x128xf32, #tpu.memory_space<vmem>>, vector<1x128xf32>
    %113 = vector.broadcast %112 : vector<1x128xf32> to vector<8x128xf32>
    %114 = arith.addf %111, %113 : vector<8x128xf32>
    %cst_44 = arith.constant 0.000000e+00 : f32
    %115 = vector.broadcast %cst_44 : f32 to vector<8x128xf32>
    %116 = arith.maximumf %114, %115 : vector<8x128xf32>
    %c1056 = arith.constant 1056 : index
    %c0_45 = arith.constant 0 : index
    %117 = vector.load %arg2[%c1056, %c0_45] : memref<1184x128xbf16, #tpu.memory_space<vmem>>, vector<128x128xbf16>
    %118 = arith.truncf %116 : vector<8x128xf32> to vector<8x128xbf16>
    %cst_46 = arith.constant dense<0.000000e+00> : vector<8x128xf32>
    %119 = tpu.matmul %118, %117, %cst_46 {dimension_numbers = #tpu.dot_dimension_numbers<[1], [0], [0], [1], [0, 0, 1, 1], [], []>} : vector<8x128xbf16>, vector<128x128xbf16>, vector<8x128xf32> -> vector<8x128xf32>
    %c9 = arith.constant 9 : index
    %c0_47 = arith.constant 0 : index
    %120 = vector.load %arg3[%c9, %c0_47] : memref<16x128xf32, #tpu.memory_space<vmem>>, vector<1x128xf32>
    %121 = vector.broadcast %120 : vector<1x128xf32> to vector<8x128xf32>
    %122 = arith.addf %119, %121 : vector<8x128xf32>
    %123 = vector.extract_strided_slice %122 {offsets = [0, 0], sizes = [8, 1], strides = [1, 1]} : vector<8x128xf32> to vector<8x1xf32>
    %124 = tpu.transpose %123, [1, 0] : vector<8x1xf32> -> vector<1x8xf32>
    %c0_48 = arith.constant 0 : index
    %c0_49 = arith.constant 0 : index
    %c0_50 = arith.constant 0 : index
    %125 = vector.load %arg4[%c0_48, %c0_49, %c0_50] : memref<1x1x8xf32, #tpu.memory_space<vmem>>, vector<1x1x8xf32>
    %126 = vector.shape_cast %125 : vector<1x1x8xf32> to vector<1x8xf32>
    %127 = vector.shape_cast %124 : vector<1x8xf32> to vector<1x1x8xf32>
    tpu.vector_store %arg4[%c0_48, %c0_49, %c0_50], %127 {strides = array<i32>} : memref<1x1x8xf32, #tpu.memory_space<vmem>>, vector<1x1x8xf32>,
    return
  }
  func.func @transform_0(%arg0: i32) -> (i32, i32, i32) {
    %c0_i32 = arith.constant 0 : i32
    %c0_i32_0 = arith.constant 0 : i32
    %c0_i32_1 = arith.constant 0 : i32
    return %arg0, %c0_i32, %c0_i32_0 : i32, i32, i32
  }
  func.func @transform_1(%arg0: i32) -> (i32, i32) {
    %c0_i32 = arith.constant 0 : i32
    %c0_i32_0 = arith.constant 0 : i32
    %c0_i32_1 = arith.constant 0 : i32
    return %c0_i32, %c0_i32_0 : i32, i32
  }
  func.func @transform_2(%arg0: i32) -> (i32, i32) {
    %c0_i32 = arith.constant 0 : i32
    %c0_i32_0 = arith.constant 0 : i32
    %c0_i32_1 = arith.constant 0 : i32
    return %c0_i32, %c0_i32_0 : i32, i32
  }
  func.func @transform_3(%arg0: i32) -> (i32, i32, i32) {
    %c0_i32 = arith.constant 0 : i32
    %c0_i32_0 = arith.constant 0 : i32
    %c0_i32_1 = arith.constant 0 : i32
    return %arg0, %c0_i32, %c0_i32_0 : i32, i32, i32
  }
}

</mosaic_0001>

<bundles_post_ra>
// kernel: tpu_custom_call.1
= control target key start
LH: loop header
LB: loop body
LE: loop exit
PB: predicated region body
PF: predicated region fallthrough
CT: control target
= control target key end

     0   :  { %8 = vsyncpa [#allocation3], 0  ;;  %s2489_s0 = inlined_call_operand.vmem [shape: f32[8,5,13], index: 0, kind: input, shape index: {}]   ;;  %s2490_s1 = inlined_call_operand.hbm [shape: bf16[1184,128], index: 1, kind: input, shape index: {}]   ;;  %s2491_s2 = inlined_call_operand.vmem [shape: f32[16,128], index: 2, kind: input, shape index: {}]   ;;  %s2492_s3 = inlined_call_operand.hbm [shape: f32[1,1,8], index: 3, kind: output, shape index: {}]  }
   0x1   :  { %9 = vsyncpa [#allocation4], 0  ;;  %s2155_s12 = smov [#allocation2]  }
   0x2   :  { %s17_s13 = sshll.u32 %s2155_s12, 4  ;;  %s18_s13 = int_to_ptr.vmem [resolvable:$true] %s17_s13 }
   0x3   :  { %s2119_s14 = scalar_lea.vmem %s18_s13, 9472  ;;  %p2124_p1 = scmp.lt.s32.totalorder %s18_s13, %s18_s13 }
   0x4   :  { %p2120_p0 = scmp.ne.s32.totalorder %s18_s13, %s2119_s14  ;;  %p2125_p2 = scmp.lt.s32.totalorder %s2119_s14, %s2119_s14 }
   0x6   :  { %p2126_p3 = por %p2125_p2, %p2124_p1 }
   0x8   :  { %p2127_p4 = pnand %p2126_p3, %p2120_p0 }
   0xa   :  { %2130 = shalt.err (!%p2127_p4)
}
   0xb   :  { %s2156_s15 = smov 64   ;;  %s2157_s16 = smov 4  }
   0xc   :  { %23 = dma.hbm_to_vmem [thread:$0]  %s2490_s1, 9472, %s18_s13, [#allocation3], %s2156_s15, %s2156_s15, %s2157_s16  }
   0xd   :  { %2151 = dma.done.wait [#allocation3], 9472  }
   0xe   :  { %2152 = vsyncadd [#allocation3], 4294957824  ;;  %v2158_v0 = vmov 0.0   ;;  %vm2159_vm0 = vmmov 0   ;;  %vm143_vm1 = vcmask 1044480   ;;  %vm47_vm2 = vcmask 1041409  }
   0xf   :  { %1774 = vmatprep.subr.mxu0 %v2158_v0  ;;  %1778 = vmatprep.mubr.msk.f32.mxu0 %vm2159_vm0, %v2158_v0  ;;  %vm50_vm3 = vcmask 1042434   ;;  %vm53_vm4 = vcmask 1043459   ;;  %vm56_vm5 = vcmask 1044484   ;;  %vm59_vm6 = vcmask 1045509   ;;  %v124_v1 = vld [vmem:[#allocation2 + $0x4] sm:$0x7] }
  0x10   :  { %1793 = vmatprep.subr.bf16.mxu1 %v2158_v0  ;;  %1809 = vmatprep.mubr.msk.bf16.mxu1 %vm2159_vm0, %v2158_v0  ;;  %vm62_vm7 = vcmask 1046534   ;;  %v123_v2 = vld [vmem:[#allocation2] sm:$0xf]  ;;  %vm65_vm8 = vcmask 1047559   ;;  %v126_v4 = vunpack.c.l.bf16 %v124_v1  ;;  %v2199_v6 = vld [vmem:[%s2489_s0 + $0x8] sm:$0x1f] }
  0x11   :  { %v2194_v3 = vld [vmem:[%s2489_s0] sm:$0x1f]  ;;  %v125_v5 = vunpack.c.l.bf16 %v123_v2  ;;  %v2204_v7 = vld [vmem:[%s2489_s0 + $0x10] sm:$0x1f]  ;;  %v2209_v8 = vld [vmem:[%s2489_s0 + $0x18] sm:$0x1f] }
  0x12   :  { %vm132_vm9 = vcmask 105472   ;;  %v2214_v9 = vld [vmem:[%s2489_s0 + $0x20] sm:$0x1f]  ;;  %v2219_v10 = vld [vmem:[%s2489_s0 + $0x28] sm:$0x1f]  ;;  %1775 = vmatpush3.msk.msra.mxu0 %vm143_vm1, %v126_v4  ;;  %v46_v13 = vrot.slane %v2199_v6, 7 }
  0x13   :  { %v2224_v11 = vld [vmem:[%s2489_s0 + $0x30] sm:$0x1f]  ;;  %v2230_v12 = vld [vmem:[%s2489_s0 + $0x38] sm:$0x1f]  ;;  %v49_v14 = vrot.slane %v2204_v7, 6  ;;  %v52_v15 = vrot.slane %v2209_v8, 5  ;;  %1776 = vmatprep.subr.mxu0 %v2158_v0 }
  0x14   :  { %v55_v16 = vrot.slane %v2214_v9, 4  ;;  %v58_v17 = vrot.slane %v2219_v10, 3  ;;  %v61_v18 = vrot.slane %v2224_v11, 2  ;;  %v64_v19 = vrot.slane %v2230_v12, 1  ;;  %1777 = vmatpush3.msra.mxu0 %v125_v5  ;;  %v2027_v25 = vld [vmem:[#allocation2 + $0x40] sm:$0xff]   ;;  %v2028_v34 = vld [vmem:[#allocation2 + $0x38] sm:$0xff]  }
  0x15   :  { %v67_v20 = vrot.slane %v2194_v3, 1  ;;  %v48_v21 = vsel %vm47_vm2, %v46_v13, %v2194_v3  ;;  %v69_v22 = vrot.slane %v2204_v7, 7  ;;  %v71_v23 = vrot.slane %v2209_v8, 6  ;;  %1821 = vmatprep.subr.bf16.mxu0 %v2158_v0  ;;  %1794 = vmatpush3.bf16.msra.mxu1 %v2027_v25  ;;  %v2029_v51 = vld [vmem:[#allocation2 + $0x30] sm:$0xff]   ;;  %v2030_v60 = vld [vmem:[#allocation2 + $0x28] sm:$0xff]   ;;  %v2032_v25 = vld [vmem:[#allocation2 + $0x18] sm:$0xff]  }
  0x16   :  { %v73_v24 = vrot.slane %v2214_v9, 5  ;;  %v51_v26 = vsel %vm50_vm3, %v49_v14, %v48_v21  ;;  %v75_v28 = vrot.slane %v2219_v10, 4  ;;  %v77_v29 = vrot.slane %v2224_v11, 3  ;;  %1795 = vmatprep.subr.bf16.mxu1 %v2158_v0  ;;  %s2161_s25 = smov [#allocation5]  }
  0x17   :  { %v68_v27 = vsel %vm47_vm2, %v2199_v6, %v67_v20  ;;  %v54_v30 = vsel %vm53_vm4, %v52_v15, %v51_v26  ;;  %v79_v32 = vrot.slane %v2230_v12, 2  ;;  %v81_v33 = vrot.slane %v2194_v3, 2  ;;  %v2033_v26 = vld [vmem:[#allocation2 + $0x10] sm:$0xff]   ;;  %s1569_s26 = sshll.u32 %s2161_s25, 4  ;;  %s1570_s26 = int_to_ptr.vmem [resolvable:$true] %s1569_s26 }
  0x18   :  { %v70_v31 = vsel %vm50_vm3, %v69_v22, %v68_v27  ;;  %v57_v35 = vsel %vm56_vm5, %v55_v16, %v54_v30  ;;  %v82_v37 = vrot.slane %v2199_v6, 1  ;;  %v85_v38 = vrot.slane %v2209_v8, 7  ;;  %v2034_v27 = vld [vmem:[#allocation2 + $0x8] sm:$0xff]   ;;  %v2037_v30 = vld [vmem:[#allocation2 + $0x70] sm:$0xff]   ;;  %s2131_s27 = scalar_lea.vmem %s1570_s26, 16  ;;  %s2135_s28 = scalar_lea.vmem %s1570_s26, 32 }
  0x19   :  { %v72_v36 = vsel %vm53_vm4, %v71_v23, %v70_v31  ;;  %v60_v39 = vsel %vm59_vm6, %v58_v17, %v57_v35  ;;  %v87_v41 = vrot.slane %v2214_v9, 6  ;;  %v89_v42 = vrot.slane %v2219_v10, 5  ;;  %1796 = vmatpush3.bf16.msra.mxu1 %v2028_v34  ;;  %v2038_v31 = vld [vmem:[#allocation2 + $0x68] sm:$0xff]   ;;  %v1578_v34 = vld [vmem:[%s2491_s2] ss:$0 sm:$0xff]  ;;  %p2132_p5 = scmp.ne.s32.totalorder %s1570_s26, %s2131_s27  ;;  %p2136_p6 = scmp.lt.s32.totalorder %s1570_s26, %s1570_s26 }
  0x1a   :  { %v74_v40 = vsel %vm56_vm5, %v73_v24, %v72_v36  ;;  %v63_v43 = vsel %vm62_vm7, %v61_v18, %v60_v39  ;;  %v83_v45 = vsel %vm47_vm2, %v82_v37, %v81_v33  ;;  %v91_v46 = vrot.slane %v2224_v11, 4  ;;  %1797 = vmatprep.subr.bf16.mxu1 %v2158_v0  ;;  %v2040_v33 = vld [vmem:[#allocation2 + $0x58] sm:$0xff]   ;;  %p2137_p7 = scmp.lt.s32.totalorder %s2135_s28, %s2131_s27 }
  0x1b   :  { %v76_v44 = vsel %vm59_vm6, %v75_v28, %v74_v40  ;;  %v2270_v47 = vsel %vm65_vm8, %v64_v19, %v63_v43  ;;  %v84_v49 = vsel %vm50_vm3, %v2204_v7, %v83_v45  ;;  %v93_v50 = vrot.slane %v2230_v12, 3  ;;  %v2031_v19 = vld [vmem:[#allocation2 + $0x20] sm:$0xff]  }
  0x1c   :  { %v78_v48 = vsel %vm62_vm7, %v77_v29, %v76_v44  ;;  %1779 = vmatmul.mubr.msk.f32.vlgmr.msra.gmra.mxu0 %vm132_vm9, %v2270_v47  ;;  %v86_v53 = vsel %vm53_vm4, %v85_v38, %v84_v49  ;;  %v95_v54 = vrot.slane %v2194_v3, 3  ;;  %v96_v55 = vrot.slane %v2199_v6, 2  ;;  %v2035_v28 = vld [vmem:[#allocation2 + $0x80] sm:$0xff]   ;;  %v2036_v29 = vld [vmem:[#allocation2 + $0x78] sm:$0xff]   ;;  %p2138_p8 = por %p2137_p7, %p2136_p6 }
  0x1d   :  { %v80_v52 = vsel %vm65_vm8, %v79_v32, %v78_v48  ;;  %1781 = vmatprep.mubr.msk.f32.mxu0 %vm2159_vm0, %v2158_v0  ;;  %v88_v56 = vsel %vm56_vm5, %v87_v41, %v86_v53  ;;  %v98_v57 = vrot.slane %v2204_v7, 1  ;;  %v101_v58 = vrot.slane %v2214_v9, 7  ;;  %1798 = vmatpush3.bf16.msra.mxu1 %v2029_v51  ;;  %v2039_v32 = vld [vmem:[#allocation2 + $0x60] sm:$0xff]  }
  0x1e   :  { %v103_v59 = vrot.slane %v2219_v10, 6  ;;  %v90_v61 = vsel %vm59_vm6, %v89_v42, %v88_v56  ;;  %v97_v62 = vsel %vm47_vm2, %v96_v55, %v95_v54  ;;  %v105_v63 = vrot.slane %v2224_v11, 5  ;;  %1799 = vmatprep.subr.bf16.mxu1 %v2158_v0  ;;  %1822 = vmatpush3.bf16.msra.mxu0 %v2035_v28  ;;  %p2139_p9 = pnand %p2138_p8, %p2132_p5 }
  0x1f   :  { %v107_v1 = vrot.slane %v2230_v12, 4  ;;  %v92_v2 = vsel %vm62_vm7, %v91_v46, %v90_v61  ;;  %v99_v4 = vsel %vm50_vm3, %v98_v57, %v97_v62  ;;  %v109_v5 = vrot.slane %v2194_v3, 4  ;;  %1823 = vmatprep.subr.bf16.mxu0 %v2158_v0  ;;  %v2051_v61 = vld [vmem:[#allocation2 + $0xc0] sm:$0xff]   ;;  %v2052_v62 = vld [vmem:[#allocation2 + $0xb8] sm:$0xff]  }
  0x20   :  { %v110_v13 = vrot.slane %v2199_v6, 3  ;;  %1782 = vmatmul.mubr.msk.f32.gmra.mxu0 %vm132_vm9, %v80_v52  ;;  %v100_v14 = vsel %vm53_vm4, %v2209_v8, %v99_v4  ;;  %v112_v15 = vrot.slane %v2204_v7, 2  ;;  %v114_v16 = vrot.slane %v2209_v8, 1  ;;  %v2056_v4 = vld [vmem:[#allocation2 + $0x98] sm:$0xff]  }
  0x21   :  { %1784 = vmatprep.mubr.msk.f32.mxu0 %vm2159_vm0, %v2158_v0  ;;  %v94_v17 = vsel %vm65_vm8, %v93_v50, %v92_v2  ;;  %v102_v3 = vsel %vm56_vm5, %v101_v58, %v100_v14  ;;  %v117_v18 = vrot.slane %v2219_v10, 7  ;;  %v119_v8 = vrot.slane %v2224_v11, 6  ;;  %1800 = vmatpush3.bf16.msra.mxu1 %v2030_v60  ;;  %v2042_v60 = vld [vmem:[#allocation2 + $0x48] sm:$0xff]   ;;  %v2055_v2 = vld [vmem:[#allocation2 + $0xa0] sm:$0xff]  }
  0x22   :  { %v111_v6 = vsel %vm47_vm2, %v110_v13, %v109_v5  ;;  %v104_v20 = vsel %vm59_vm6, %v103_v59, %v102_v3  ;;  %v121_v21 = vrot.slane %v2230_v12, 5  ;;  %1801 = vmatprep.subr.bf16.mxu1 %v2158_v0  ;;  %1824 = vmatpush3.bf16.msra.mxu0 %v2036_v29  ;;  %v2041_v59 = vld [vmem:[#allocation2 + $0x50] sm:$0xff]   ;;  %v1585_v5 = vld [vmem:[%s2491_s2 + $0x1] ss:$0 sm:$0xff]  ;;  %v2046_v29 = vld [vmem:[#allocation2 + $0xe8] sm:$0xff]   ;;  %vm1227_vm10 = vcmask 1045504  }
  0x23   :  { %v113_v7 = vsel %vm50_vm3, %v112_v15, %v111_v6  ;;  %v106_v22 = vsel %vm62_vm7, %v105_v63, %v104_v20  ;;  %1825 = vmatprep.subr.bf16.mxu0 %v2158_v0  ;;  %v2053_v63 = vld [vmem:[#allocation2 + $0xb0] sm:$0xff]   ;;  %v2043_v20 = vld [vmem:[#allocation2 + $0x100] sm:$0xff]   ;;  %vm1063_vm15 = vcmask 7168   ;;  %vm1224_vm3 = vcmask 48128  }
  0x24   :  { %v115_v23 = vsel %vm53_vm4, %v114_v16, %v113_v7  ;;  %1785 = vmatmul.mubr.msk.f32.gmra.mxu0 %vm132_vm9, %v94_v17  ;;  %v108_v10 = vsel %vm65_vm8, %v107_v1, %v106_v22  ;;  %v2054_v1 = vld [vmem:[#allocation2 + $0xa8] sm:$0xff]  }
  0x25   :  { %v116_v24 = vsel %vm56_vm5, %v2214_v9, %v115_v23  ;;  %1787 = vmatprep.mubr.msk.f32.mxu0 %vm2159_vm0, %v2158_v0  ;;  %1802 = vmatpush3.bf16.msra.mxu1 %v2031_v19  ;;  %v2044_v23 = vld [vmem:[#allocation2 + $0xf8] sm:$0xff]  }
  0x26   :  { %v118_v11 = vsel %vm59_vm6, %v117_v18, %v116_v24  ;;  %1803 = vmatprep.subr.bf16.mxu1 %v2158_v0  ;;  %1826 = vmatpush3.bf16.msra.mxu0 %v2037_v30 }
  0x27   :  { %v120_v12 = vsel %vm62_vm7, %v119_v8, %v118_v11  ;;  %1827 = vmatprep.subr.bf16.mxu0 %v2158_v0 }
  0x28   :  { %1788 = vmatmul.mubr.msk.f32.gmra.mxu0 %vm132_vm9, %v108_v10  ;;  %v122_v9 = vsel %vm65_vm8, %v121_v21, %v120_v12 }
  0x29   :  { %1790 = vmatprep.mubr.msk.f32.mxu0 %vm2159_vm0, %v2158_v0  ;;  %1804 = vmatpush3.bf16.msra.mxu1 %v2032_v25  ;;  %v2045_v25 = vld [vmem:[#allocation2 + $0xf0] sm:$0xff]  }
  0x2a   :  { %1805 = vmatprep.subr.bf16.mxu1 %v2158_v0  ;;  %1828 = vmatpush3.bf16.msra.mxu0 %v2038_v31 }
  0x2b   :  { %1829 = vmatprep.subr.bf16.mxu0 %v2158_v0 }
  0x2c   :  { %1791 = vmatmul.mubr.msk.f32.gmra.mxu0 %vm132_vm9, %v122_v9 }
  0x2d   :  { %1837 = vmatprep.mubr.msk.bf16.mxu0 %vm2159_vm0, %v2158_v0  ;;  %1806 = vmatpush3.bf16.msra.mxu1 %v2033_v26 }
  0x2e   :  { %1807 = vmatprep.subr.bf16.mxu1 %v2158_v0  ;;  %1830 = vmatpush3.bf16.msra.mxu0 %v2039_v32 }
  0x2f   :  { %1831 = vmatprep.subr.bf16.mxu0 %v2158_v0 }
  0x31   :  { %1808 = vmatpush3.bf16.msra.mxu1 %v2034_v27 }
  0x32   :  { %1849 = vmatprep.subr.bf16.mxu1 %v2158_v0  ;;  %1832 = vmatpush3.bf16.msra.mxu0 %v2040_v33 }
  0x33   :  { %1833 = vmatprep.subr.bf16.mxu0 %v2158_v0 }
  0x36   :  { %1834 = vmatpush3.bf16.msra.mxu0 %v2041_v59 }
  0x37   :  { %1835 = vmatprep.subr.bf16.mxu0 %v2158_v0 }
  0x3a   :  { %1836 = vmatpush3.bf16.msra.mxu0 %v2042_v60 }
  0x3b   :  { %1877 = vmatprep.subr.bf16.mxu0 %v2158_v0 }
  0xdc   :  { %v213_v35 = vpop.f32.mrf.mxu0 }
  0xdd   :  { %v214_v37 = vadd.f32 %v1578_v34, %v213_v35 }
  0xde   :  { %v1780_v36 = vpop.f32.mrf.mxu0 }
  0xdf   :  { %v237_v41 = vmax.f32 %v214_v37, 0.0  ;;  %v2048_v36 = vld [vmem:[#allocation2 + $0xd8] sm:$0xff]  }
  0xe0   :  { %v218_v38 = vpop.f32.mrf.mxu0 }
  0xe1   :  { %v219_v39 = vadd.f32 %v1578_v34, %v218_v38 }
  0xe2   :  { %v1783_v40 = vpop.f32.mrf.mxu0 }
  0xe3   :  { %v238_v42 = vmax.f32 %v219_v39, 0.0  ;;  %v2049_v39 = vld [vmem:[#allocation2 + $0xd0] sm:$0xff]  }
  0xe4   :  { %v223_v43 = vpop.f32.mrf.mxu0 }
  0xe5   :  { %v258_v44 = vpack.c.bf16 %v238_v42, %v237_v41  ;;  %v224_v45 = vadd.f32 %v1578_v34, %v223_v43  ;;  %v2050_v41 = vld [vmem:[#allocation2 + $0xc8] sm:$0xff]  }
  0xe6   :  { %v1786_v46 = vpop.f32.mrf.mxu0 }
  0xe7   :  { %1810 = vmatmul.mubr.bf16.vlgmr.msra.gmra.mxu1 %v258_v44  ;;  %v239_v49 = vmax.f32 %v224_v45, 0.0  ;;  %v2057_v44 = vld [vmem:[#allocation2 + $0x90] sm:$0xff]   ;;  %v2058_v45 = vld [vmem:[#allocation2 + $0x88] sm:$0xff]  }
  0xe8   :  { %v228_v48 = vpop.f32.mrf.mxu0  ;;  %1813 = vmatprep.mubr.msk.bf16.mxu1 %vm2159_vm0, %v2158_v0  ;;  %1850 = vmatpush3.bf16.msra.mxu1 %v2051_v61 }
  0xe9   :  { %v229_v50 = vadd.f32 %v1578_v34, %v228_v48  ;;  %1851 = vmatprep.subr.bf16.mxu1 %v2158_v0  ;;  %v1602_v48 = vld [vmem:[%s2491_s2 + $0x2] ss:$0 sm:$0xff] }
  0xea   :  { %v1789_v51 = vpop.f32.mrf.mxu0 }
  0xeb   :  { %v240_v52 = vmax.f32 %v229_v50, 0.0 }
  0xec   :  { %v233_v53 = vpop.f32.mrf.mxu0  ;;  %1852 = vmatpush3.bf16.msra.mxu1 %v2052_v62  ;;  %v2060_v62 = vld [vmem:[#allocation2 + $0x138] sm:$0xff]  }
  0xed   :  { %v259_v54 = vpack.c.bf16 %v240_v52, %v239_v49  ;;  %v234_v55 = vadd.f32 %v1578_v34, %v233_v53  ;;  %1853 = vmatprep.subr.bf16.mxu1 %v2158_v0  ;;  %v2047_v34 = vld [vmem:[#allocation2 + $0xe0] sm:$0xff]  }
  0xee   :  { %v1792_v56 = vpop.f32.mrf.mxu0 }
  0xef   :  { %1814 = vmatmul.mubr.bf16.gmra.mxu1 %v259_v54  ;;  %v241_v57 = vmax.f32 %v234_v55, 0.0 }
  0xf0   :  { %1817 = vmatprep.mubr.msk.bf16.mxu1 %vm2159_vm0, %v2158_v0  ;;  %1854 = vmatpush3.bf16.msra.mxu1 %v2053_v63 }
  0xf1   :  { %v260_v58 = vpack.c.bf16 %v241_v57, %v241_v57  ;;  %1855 = vmatprep.subr.bf16.mxu1 %v2158_v0  ;;  %v2059_v57 = vld [vmem:[#allocation2 + $0x140] sm:$0xff]  }
  0xf4   :  { %1856 = vmatpush3.bf16.msra.mxu1 %v2054_v1 }
  0xf5   :  { %1857 = vmatprep.subr.bf16.mxu1 %v2158_v0 }
  0xf7   :  { %1818 = vmatmul.mubr.bf16.gmra.mxu1 %v260_v58 }
  0xf8   :  { %1865 = vmatprep.mubr.msk.bf16.mxu1 %vm2159_vm0, %v2158_v0  ;;  %1858 = vmatpush3.bf16.msra.mxu1 %v2055_v2 }
  0xf9   :  { %1859 = vmatprep.subr.bf16.mxu1 %v2158_v0 }
  0xfc   :  { %1860 = vmatpush3.bf16.msra.mxu1 %v2056_v4 }
  0xfd   :  { %1861 = vmatprep.subr.bf16.mxu1 %v2158_v0 }
 0x100   :  { %1862 = vmatpush3.bf16.msra.mxu1 %v2057_v44  ;;  %v2070_v44 = vld [vmem:[#allocation2 + $0x168] sm:$0xff]  }
 0x101   :  { %1863 = vmatprep.subr.bf16.mxu1 %v2158_v0 }
 0x104   :  { %1864 = vmatpush3.bf16.msra.mxu1 %v2058_v45  ;;  %v2071_v45 = vld [vmem:[#allocation2 + $0x160] sm:$0xff]  }
 0x105   :  { %1897 = vmatprep.subr.bf16.mxu1 %v2158_v0 }
 0x1a7   :  { %v348_v13 = vpop.f32.mrf.mxu1 }
 0x1a8   :  { %v349_v15 = vadd.f32 %v1585_v5, %v348_v13  ;;  %v2061_v13 = vld [vmem:[#allocation2 + $0x130] sm:$0xff]  }
 0x1a9   :  { %v1811_v14 = vpop.f32.mrf.mxu1 }
 0x1aa   :  { %v370_v6 = vmax.f32 %v349_v15, 0.0 }
 0x1ab   :  { %v351_v16 = vpop.f32.mrf.mxu1 }
 0x1ac   :  { %v352_v17 = vadd.f32 %v1585_v5, %v351_v16 }
 0x1ad   :  { %v1812_v3 = vpop.f32.mrf.mxu1 }
 0x1ae   :  { %v371_v18 = vmax.f32 %v352_v17, 0.0 }
 0x1af   :  { %v356_v19 = vpop.f32.mrf.mxu1 }
 0x1b0   :  { %v391_v7 = vpack.c.bf16 %v371_v18, %v370_v6  ;;  %v357_v21 = vadd.f32 %v1585_v5, %v356_v19  ;;  %v641_v35 = vadd.f32 %v371_v18, %v370_v6  ;;  %v2062_v6 = vld [vmem:[#allocation2 + $0x128] sm:$0xff]  }
 0x1b1   :  { %v1815_v8 = vpop.f32.mrf.mxu1 }
 0x1b2   :  { %1838 = vmatmul.mubr.bf16.vlgmr.msra.gmra.mxu0 %v391_v7  ;;  %v372_v11 = vmax.f32 %v357_v21, 0.0  ;;  %v2064_v7 = vld [vmem:[#allocation2 + $0x118] sm:$0xff]   ;;  %v1620_v21 = vld [vmem:[%s2491_s2 + $0x4] ss:$0 sm:$0xff] }
 0x1b3   :  { %1878 = vmatpush3.bf16.msra.mxu0 %v2043_v20  ;;  %v359_v22 = vpop.f32.mrf.mxu1  ;;  %1841 = vmatprep.mubr.msk.bf16.mxu0 %vm2159_vm0, %v2158_v0  ;;  %v2063_v20 = vld [vmem:[#allocation2 + $0x120] sm:$0xff]  }
 0x1b4   :  { %v360_v24 = vadd.f32 %v1585_v5, %v359_v22  ;;  %1879 = vmatprep.subr.bf16.mxu0 %v2158_v0  ;;  %v642_v37 = vadd.f32 %v641_v35, %v372_v11  ;;  %v2065_v22 = vld [vmem:[#allocation2 + $0x110] sm:$0xff]  }
 0x1b5   :  { %v1816_v10 = vpop.f32.mrf.mxu1 }
 0x1b6   :  { %v373_v12 = vmax.f32 %v360_v24, 0.0 }
 0x1b7   :  { %1880 = vmatpush3.bf16.msra.mxu0 %v2044_v23  ;;  %v364_v9 = vpop.f32.mrf.mxu1 }
 0x1b8   :  { %v392_v26 = vpack.c.bf16 %v373_v12, %v372_v11  ;;  %v365_v27 = vadd.f32 %v1585_v5, %v364_v9  ;;  %1881 = vmatprep.subr.bf16.mxu0 %v2158_v0  ;;  %v643_v38 = vadd.f32 %v642_v37, %v373_v12 }
 0x1b9   :  { %v1819_v28 = vpop.f32.mrf.mxu1 }
 0x1ba   :  { %1842 = vmatmul.mubr.bf16.gmra.mxu0 %v392_v26  ;;  %v374_v31 = vmax.f32 %v365_v27, 0.0 }
 0x1bb   :  { %1882 = vmatpush3.bf16.msra.mxu0 %v2045_v25  ;;  %v367_v30 = vpop.f32.mrf.mxu1  ;;  %1845 = vmatprep.mubr.msk.bf16.mxu0 %vm2159_vm0, %v2158_v0  ;;  %v2066_v25 = vld [vmem:[#allocation2 + $0x108] sm:$0xff]  }
 0x1bc   :  { %1883 = vmatprep.subr.bf16.mxu0 %v2158_v0  ;;  %v393_v33 = vpack.c.bf16 %v374_v31, %v374_v31  ;;  %v644_v40 = vadd.f32 %v643_v38, %v374_v31 }
 0x1bd   :  { %v1820_v32 = vpop.f32.mrf.mxu1 }
 0x1be   :  { %v646_v42 = vmul.f32 0.2, %v644_v40 }
 0x1bf   :  { %1884 = vmatpush3.bf16.msra.mxu0 %v2046_v29 }
 0x1c0   :  { %1885 = vmatprep.subr.bf16.mxu0 %v2158_v0  ;;  %v663_v43 = vpack.c.bf16 %v646_v42, %v646_v42  ;;  %v2068_v42 = vld [vmem:[#allocation2 + $0x178] sm:$0xff]  }
 0x1c2   :  { %1846 = vmatmul.mubr.bf16.gmra.mxu0 %v393_v33 }
 0x1c3   :  { %1886 = vmatpush3.bf16.msra.mxu0 %v2047_v34  ;;  %1893 = vmatprep.mubr.msk.bf16.mxu0 %vm2159_vm0, %v2158_v0 }
 0x1c4   :  { %1887 = vmatprep.subr.bf16.mxu0 %v2158_v0 }
 0x1c7   :  { %1888 = vmatpush3.bf16.msra.mxu0 %v2048_v36 }
 0x1c8   :  { %1889 = vmatprep.subr.bf16.mxu0 %v2158_v0 }
 0x1cb   :  { %1890 = vmatpush3.bf16.msra.mxu0 %v2049_v39 }
 0x1cc   :  { %1891 = vmatprep.subr.bf16.mxu0 %v2158_v0 }
 0x1cf   :  { %1892 = vmatpush3.bf16.msra.mxu0 %v2050_v41  ;;  %v2067_v41 = vld [vmem:[#allocation2 + $0x180] sm:$0xff]  }
 0x1d0   :  { %1925 = vmatprep.subr.bf16.mxu0 %v2158_v0 }
 0x1d2   :  { %1894 = vmatmul.mubr.bf16.vlgmr.msra.gmra.mxu0 %v663_v43  ;;  %v2069_v43 = vld [vmem:[#allocation2 + $0x170] sm:$0xff]  }
 0x1d3   :  { %1941 = vmatprep.mubr.msk.bf16.mxu0 %vm2159_vm0, %v2158_v0  ;;  %1926 = vmatpush3.bf16.msra.mxu0 %v2067_v41 }
 0x1d4   :  { %1927 = vmatprep.subr.bf16.mxu0 %v2158_v0 }
 0x1d7   :  { %1928 = vmatpush3.bf16.msra.mxu0 %v2068_v42 }
 0x1d8   :  { %1929 = vmatprep.subr.bf16.mxu0 %v2158_v0 }
 0x1db   :  { %1930 = vmatpush3.bf16.msra.mxu0 %v2069_v43 }
 0x1dc   :  { %1931 = vmatprep.subr.bf16.mxu0 %v2158_v0 }
 0x1df   :  { %1932 = vmatpush3.bf16.msra.mxu0 %v2070_v44 }
 0x1e0   :  { %1933 = vmatprep.subr.bf16.mxu0 %v2158_v0 }
 0x1e3   :  { %1934 = vmatpush3.bf16.msra.mxu0 %v2071_v45 }
 0x1e4   :  { %1935 = vmatprep.subr.bf16.mxu0 %v2158_v0 }
 0x272   :  { %v476_v46 = vpop.f32.mrf.mxu0 }
 0x273   :  { %v503_v50 = vadd.f32 %v1602_v48, %v476_v46 }
 0x274   :  { %v1839_v49 = vpop.f32.mrf.mxu0 }
 0x275   :  { %v508_v54 = vmax.f32 %v503_v50, 0.0  ;;  %v2074_v49 = vld [vmem:[#allocation2 + $0x148] sm:$0xff]  }
 0x276   :  { %v479_v51 = vpop.f32.mrf.mxu0 }
 0x277   :  { %v504_v52 = vadd.f32 %v1602_v48, %v479_v51 }
 0x278   :  { %v1840_v53 = vpop.f32.mrf.mxu0 }
 0x279   :  { %v509_v55 = vmax.f32 %v504_v52, 0.0 }
 0x27a   :  { %v484_v56 = vpop.f32.mrf.mxu0 }
 0x27b   :  { %v529_v58 = vpack.c.bf16 %v509_v55, %v508_v54  ;;  %v505_v60 = vadd.f32 %v1602_v48, %v484_v56 }
 0x27c   :  { %v1843_v59 = vpop.f32.mrf.mxu0 }
 0x27d   :  { %1866 = vmatmul.mubr.bf16.vlgmr.msra.gmra.mxu1 %v529_v58  ;;  %v510_v2 = vmax.f32 %v505_v60, 0.0 }
 0x27e   :  { %1898 = vmatpush3.bf16.msra.mxu1 %v2059_v57  ;;  %v487_v61 = vpop.f32.mrf.mxu0  ;;  %1869 = vmatprep.mubr.msk.bf16.mxu1 %vm2159_vm0, %v2158_v0 }
 0x27f   :  { %v506_v63 = vadd.f32 %v1602_v48, %v487_v61  ;;  %1899 = vmatprep.subr.bf16.mxu1 %v2158_v0 }
 0x280   :  { %v1844_v1 = vpop.f32.mrf.mxu0 }
 0x281   :  { %v511_v4 = vmax.f32 %v506_v63, 0.0 }
 0x282   :  { %1900 = vmatpush3.bf16.msra.mxu1 %v2060_v62  ;;  %v492_v5 = vpop.f32.mrf.mxu0  ;;  %v1621_v62 = vld [vmem:[%s2491_s2 + $0x5] ss:$0 sm:$0xff] }
 0x283   :  { %1901 = vmatprep.subr.bf16.mxu1 %v2158_v0  ;;  %v507_v14 = vadd.f32 %v1602_v48, %v492_v5  ;;  %v530_v15 = vpack.c.bf16 %v511_v4, %v510_v2  ;;  %v2073_v48 = vld [vmem:[#allocation2 + $0x150] sm:$0xff]  }
 0x284   :  { %v1847_v16 = vpop.f32.mrf.mxu0 }
 0x285   :  { %v512_v17 = vmax.f32 %v507_v14, 0.0  ;;  %1870 = vmatmul.mubr.bf16.gmra.mxu1 %v530_v15 }
 0x286   :  { %1902 = vmatpush3.bf16.msra.mxu1 %v2061_v13  ;;  %v495_v3 = vpop.f32.mrf.mxu0  ;;  %1873 = vmatprep.mubr.msk.bf16.mxu1 %vm2159_vm0, %v2158_v0 }
 0x287   :  { %1903 = vmatprep.subr.bf16.mxu1 %v2158_v0  ;;  %v531_v19 = vpack.c.bf16 %v512_v17, %v512_v17 }
 0x288   :  { %v1848_v18 = vpop.f32.mrf.mxu0 }
 0x28a   :  { %1904 = vmatpush3.bf16.msra.mxu1 %v2062_v6 }
 0x28b   :  { %1905 = vmatprep.subr.bf16.mxu1 %v2158_v0 }
 0x28d   :  { %1874 = vmatmul.mubr.bf16.gmra.mxu1 %v531_v19 }
 0x28e   :  { %1906 = vmatpush3.bf16.msra.mxu1 %v2063_v20  ;;  %1913 = vmatprep.mubr.msk.bf16.mxu1 %vm2159_vm0, %v2158_v0 }
 0x28f   :  { %1907 = vmatprep.subr.bf16.mxu1 %v2158_v0 }
 0x292   :  { %v746_v8 = vpop.f32.mrf.mxu0  ;;  %1908 = vmatpush3.bf16.msra.mxu1 %v2064_v7 }
 0x293   :  { %v752_v23 = vadd.f32 %v746_v8, %v476_v46  ;;  %v753_v24 = vadd.f32 %v746_v8, %v479_v51  ;;  %1909 = vmatprep.subr.bf16.mxu1 %v2158_v0  ;;  %v754_v28 = vadd.f32 %v746_v8, %v484_v56  ;;  %v755_v29 = vadd.f32 %v746_v8, %v487_v61  ;;  %v2072_v46 = vld [vmem:[#allocation2 + $0x158] sm:$0xff]  }
 0x294   :  { %v1895_v10 = vpop.f32.mrf.mxu0  ;;  %v756_v36 = vadd.f32 %v746_v8, %v492_v5  ;;  %1936 = vmatpush3.bf16.msra.mxu0 %v2072_v46 }
 0x295   :  { %v762_v11 = vadd.f32 %v1620_v21, %v752_v23  ;;  %v763_v12 = vadd.f32 %v1620_v21, %v753_v24  ;;  %v764_v32 = vadd.f32 %v1620_v21, %v754_v28  ;;  %v765_v33 = vadd.f32 %v1620_v21, %v755_v29  ;;  %1937 = vmatprep.subr.bf16.mxu0 %v2158_v0  ;;  %v2076_v29 = vld [vmem:[#allocation2 + $0x1c0] sm:$0xff]  }
 0x296   :  { %v749_v9 = vpop.f32.mrf.mxu0  ;;  %1910 = vmatpush3.bf16.msra.mxu1 %v2065_v22  ;;  %v766_v38 = vadd.f32 %v1620_v21, %v756_v36 }
 0x297   :  { %v767_v26 = vmax.f32 %v762_v11, 0.0  ;;  %v768_v27 = vmax.f32 %v763_v12, 0.0  ;;  %1911 = vmatprep.subr.bf16.mxu1 %v2158_v0  ;;  %v769_v34 = vmax.f32 %v764_v32, 0.0  ;;  %v770_v35 = vmax.f32 %v765_v33, 0.0  ;;  %v1630_v32 = vld [vmem:[%s2491_s2 + $0x6] ss:$0 sm:$0xff] }
 0x298   :  { %v1896_v30 = vpop.f32.mrf.mxu0  ;;  %v771_v39 = vmax.f32 %v766_v38, 0.0  ;;  %1938 = vmatpush3.bf16.msra.mxu0 %v2073_v48 }
 0x299   :  { %v788_v31 = vpack.c.bf16 %v768_v27, %v767_v26  ;;  %v789_v37 = vpack.c.bf16 %v770_v35, %v769_v34  ;;  %1939 = vmatprep.subr.bf16.mxu0 %v2158_v0  ;;  %v2075_v26 = vld [vmem:[#allocation2 + $0x1c8] sm:$0xff]   ;;  %v2077_v30 = vld [vmem:[#allocation2 + $0x1b8] sm:$0xff]  }
 0x29a   :  { %1912 = vmatpush3.bf16.msra.mxu1 %v2066_v25  ;;  %v790_v40 = vpack.c.bf16 %v771_v39, %v771_v39  ;;  %v2160_v25 = vmov 0   ;;  %v1117_v27 = vld [vmem:[#allocation2 + $0x188] sm:$0x7] }
 0x29b   :  { %1953 = vmatprep.subr.bf16.mxu1 %v2158_v0  ;;  %2026 = vset.pattern.permute.xlu1 %v2160_v25  ;;  %v1118_v28 = vunpack.c.l.bf16 %v1117_v27 }
 0x29c   :  { %1940 = vmatpush3.bf16.msra.mxu0 %v2074_v49  ;;  %2025 = vset.pattern.permute.xlu0 %v2160_v25 }
 0x29d   :  { %1914 = vmatmul.mubr.bf16.vlgmr.msra.gmra.mxu1 %v788_v31  ;;  %1973 = vmatprep.subr.mxu0 %v2158_v0  ;;  %v2078_v31 = vld [vmem:[#allocation2 + $0x1b0] sm:$0xff]  }
 0x29e   :  { %1917 = vmatprep.mubr.msk.bf16.mxu1 %vm2159_vm0, %v2158_v0  ;;  %1954 = vmatpush3.bf16.msra.mxu1 %v2075_v26 }
 0x29f   :  { %1955 = vmatprep.subr.bf16.mxu1 %v2158_v0 }
 0x2a2   :  { %1956 = vmatpush3.bf16.msra.mxu1 %v2076_v29 }
 0x2a3   :  { %1957 = vmatprep.subr.bf16.mxu1 %v2158_v0 }
 0x2a5   :  { %1918 = vmatmul.mubr.bf16.gmra.mxu1 %v789_v37 }
 0x2a6   :  { %1921 = vmatprep.mubr.msk.bf16.mxu1 %vm2159_vm0, %v2158_v0  ;;  %1958 = vmatpush3.bf16.msra.mxu1 %v2077_v30 }
 0x2a7   :  { %1959 = vmatprep.subr.bf16.mxu1 %v2158_v0 }
 0x2aa   :  { %1960 = vmatpush3.bf16.msra.mxu1 %v2078_v31  ;;  %v2081_v31 = vld [vmem:[#allocation2 + $0x198] sm:$0xff]  }
 0x2ab   :  { %1961 = vmatprep.subr.bf16.mxu1 %v2158_v0 }
 0x2ad   :  { %1922 = vmatmul.mubr.bf16.gmra.mxu1 %v790_v40 }
 0x2ae   :  { %1969 = vmatprep.mubr.msk.bf16.mxu1 %vm2159_vm0, %v2158_v0 }
 0x33d   :  { %v2413_v50 = vpop.f32.mrf.mxu1 }
 0x33f   :  { %v1867_v51 = vpop.f32.mrf.mxu1 }
 0x341   :  { %v2415_v52 = vpop.f32.mrf.mxu1 }
 0x343   :  { %v1868_v53 = vpop.f32.mrf.mxu1 }
 0x345   :  { %v2417_v54 = vpop.f32.mrf.mxu1 }
 0x347   :  { %v1871_v55 = vpop.f32.mrf.mxu1 }
 0x349   :  { %v2419_v56 = vpop.f32.mrf.mxu1 }
 0x34b   :  { %v1872_v57 = vpop.f32.mrf.mxu1 }
 0x34d   :  { %v2421_v58 = vpop.f32.mrf.mxu1 }
 0x34f   :  { %v1875_v59 = vpop.f32.mrf.mxu1 }
 0x351   :  { %v638_v60 = vpop.f32.mrf.mxu1 }
 0x353   :  { %v1876_v61 = vpop.f32.mrf.mxu1 }
 0x35d   :  { %v878_v63 = vpop.f32.mrf.mxu1 }
 0x35e   :  { %v879_v2 = vadd.f32 %v1621_v62, %v878_v63 }
 0x35f   :  { %v1915_v1 = vpop.f32.mrf.mxu1 }
 0x360   :  { %v900_v14 = vmax.f32 %v879_v2, 0.0 }
 0x361   :  { %v881_v4 = vpop.f32.mrf.mxu1 }
 0x362   :  { %v882_v5 = vadd.f32 %v1621_v62, %v881_v4 }
 0x363   :  { %v1916_v13 = vpop.f32.mrf.mxu1 }
 0x364   :  { %v901_v15 = vmax.f32 %v882_v5, 0.0 }
 0x365   :  { %v886_v16 = vpop.f32.mrf.mxu1 }
 0x366   :  { %v921_v17 = vpack.c.bf16 %v901_v15, %v900_v14  ;;  %v887_v6 = vadd.f32 %v1621_v62, %v886_v16 }
 0x367   :  { %v1919_v3 = vpop.f32.mrf.mxu1 }
 0x368   :  { %1942 = vmatmul.mubr.bf16.vlgmr.msra.gmra.mxu0 %v921_v17  ;;  %v902_v7 = vmax.f32 %v887_v6, 0.0 }
 0x369   :  { %v889_v18 = vpop.f32.mrf.mxu1  ;;  %1945 = vmatprep.mubr.msk.bf16.mxu0 %vm2159_vm0, %v2158_v0  ;;  %1974 = vmatpush3.msk.msra.mxu0 %vm1227_vm10, %v1118_v28  ;;  %v2080_v28 = vld [vmem:[#allocation2 + $0x1a0] sm:$0xff]  }
 0x36a   :  { %v890_v19 = vadd.f32 %v1621_v62, %v889_v18  ;;  %1978 = vmatprep.subr.bf16.mxu0 %v2158_v0 }
 0x36b   :  { %v1920_v20 = vpop.f32.mrf.mxu1 }
 0x36c   :  { %v903_v8 = vmax.f32 %v890_v19, 0.0 }
 0x36d   :  { %v894_v21 = vpop.f32.mrf.mxu1 }
 0x36e   :  { %v922_v22 = vpack.c.bf16 %v903_v8, %v902_v7  ;;  %v895_v23 = vadd.f32 %v1621_v62, %v894_v21 }
 0x36f   :  { %v1923_v24 = vpop.f32.mrf.mxu1 }
 0x370   :  { %1946 = vmatmul.mubr.bf16.gmra.mxu0 %v922_v22  ;;  %v904_v11 = vmax.f32 %v895_v23, 0.0 }
 0x371   :  { %v897_v10 = vpop.f32.mrf.mxu1  ;;  %1949 = vmatprep.mubr.msk.bf16.mxu0 %vm2159_vm0, %v2158_v0 }
 0x372   :  { %v923_v9 = vpack.c.bf16 %v904_v11, %v904_v11 }
 0x373   :  { %v1924_v12 = vpop.f32.mrf.mxu1 }
 0x378   :  { %1950 = vmatmul.mubr.bf16.gmra.mxu0 %v923_v9  ;;  %v2079_v9 = vld [vmem:[#allocation2 + $0x1a8] sm:$0xff]  }
 0x379   :  { %1975 = vmatprep.mubr.msk.f32.mxu0 %vm2159_vm0, %v2158_v0  ;;  %1962 = vmatpush3.bf16.msra.mxu1 %v2079_v9 }
 0x37a   :  { %1963 = vmatprep.subr.bf16.mxu1 %v2158_v0 }
 0x37d   :  { %1964 = vmatpush3.bf16.msra.mxu1 %v2080_v28 }
 0x37e   :  { %1965 = vmatprep.subr.bf16.mxu1 %v2158_v0 }
 0x380   :  { %1976 = vmatmul.mubr.msk.f32.vlgmr.msra.gmra.mxu0 %vm1224_vm3, %v2270_v47  ;;  %v2087_v47 = vld [vmem:[#allocation2 + $0x1e8] sm:$0xff]  }
 0x381   :  { %1966 = vmatpush3.bf16.msra.mxu1 %v2081_v31  ;;  %1994 = vmatprep.mubr.msk.bf16.mxu0 %vm2159_vm0, %v2158_v0 }
 0x382   :  { %1967 = vmatprep.subr.bf16.mxu1 %v2158_v0 }
 0x428   :  { %v1011_v33 = vpop.f32.mrf.mxu0 }
 0x429   :  { %v1012_v35 = vadd.f32 %v1630_v32, %v1011_v33  ;;  %v2082_v33 = vld [vmem:[#allocation2 + $0x190] sm:$0xff]  }
 0x42a   :  { %v1943_v34 = vpop.f32.mrf.mxu0  ;;  %1968 = vmatpush3.bf16.msra.mxu1 %v2082_v33 }
 0x42b   :  { %v1033_v39 = vmul.f32 1.442695, %v1012_v35  ;;  %vm1043_vm12 = vcmp.ne.f32.partialorder %v1012_v35, 0.0  ;;  %1998 = vmatprep.subr.bf16.mxu1 %v2158_v0  ;;  %v2083_v34 = vld [vmem:[#allocation2 + $0x208] sm:$0xff]   ;;  %v2084_v35 = vld [vmem:[#allocation2 + $0x200] sm:$0xff]  }
 0x42c   :  { %v1014_v36 = vpop.f32.mrf.mxu0  ;;  %v1639_v4 = vsel %vm1043_vm12, 1.0, %v2158_v0  ;;  %1979 = vmatpush3.bf16.msra.mxu0 %v2083_v34 }
 0x42d   :  { %v1015_v37 = vadd.f32 %v1630_v32, %v1014_v36  ;;  %1980 = vmatprep.subr.bf16.mxu0 %v2158_v0  ;;  %v2085_v36 = vld [vmem:[#allocation2 + $0x1f8] sm:$0xff]  }
 0x42e   :  { %v1944_v38 = vpop.f32.mrf.mxu0 }
 0x42f   :  { %v1035_v40 = vmul.f32 1.442695, %v1015_v37  ;;  %vm1044_vm11 = vcmp.ne.f32.partialorder %v1015_v37, 0.0  ;;  %v2086_v37 = vld [vmem:[#allocation2 + $0x1f0] sm:$0xff]   ;;  %v2088_v38 = vld [vmem:[#allocation2 + $0x1e0] sm:$0xff]  }
 0x430   :  { %v1019_v41 = vpop.f32.mrf.mxu0  ;;  %v1640_v63 = vsel %vm1044_vm11, 1.0, %v2158_v0  ;;  %1981 = vmatpush3.bf16.msra.mxu0 %v2084_v35 }
 0x431   :  { %2099 = vpow2.f32 %v1035_v40  ;;  %v1020_v42 = vadd.f32 %v1630_v32, %v1019_v41  ;;  %1982 = vmatprep.subr.bf16.mxu0 %v2158_v0 }
 0x432   :  { %v1947_v43 = vpop.f32.mrf.mxu0  ;;  %2101 = vpow2.f32 %v1033_v39  ;;  %v1603_v39 = vld [vmem:[%s2491_s2 + $0x3] ss:$0 sm:$0xff] }
 0x433   :  { %v1037_v44 = vmul.f32 1.442695, %v1020_v42  ;;  %vm1045_vm13 = vcmp.ne.f32.partialorder %v1020_v42, 0.0  ;;  %v620_v42 = vadd.f32 %v1603_v39, %v2413_v50  ;;  %v623_v43 = vadd.f32 %v1603_v39, %v2415_v52 }
 0x434   :  { %v1022_v45 = vpop.f32.mrf.mxu0  ;;  %v1641_v5 = vsel %vm1045_vm13, 1.0, %v2158_v0  ;;  %1983 = vmatpush3.bf16.msra.mxu0 %v2085_v36 }
 0x435   :  { %2103 = vpow2.f32 %v1037_v44  ;;  %v1023_v46 = vadd.f32 %v1630_v32, %v1022_v45  ;;  %1984 = vmatprep.subr.bf16.mxu0 %v2158_v0  ;;  %v628_v45 = vadd.f32 %v1603_v39, %v2417_v54 }
 0x436   :  { %v1948_v48 = vpop.f32.mrf.mxu0 }
 0x437   :  { %v1039_v49 = vmul.f32 1.442695, %v1023_v46  ;;  %vm1046_vm14 = vcmp.ne.f32.partialorder %v1023_v46, 0.0 }
 0x438   :  { %v1027_v51 = vpop.f32.mrf.mxu0  ;;  %v1642_v17 = vsel %vm1046_vm14, 1.0, %v2158_v0  ;;  %1985 = vmatpush3.bf16.msra.mxu0 %v2086_v37 }
 0x439   :  { %2105 = vpow2.f32 %v1039_v49  ;;  %v1028_v53 = vadd.f32 %v1630_v32, %v1027_v51  ;;  %1986 = vmatprep.subr.bf16.mxu0 %v2158_v0  ;;  %v631_v51 = vadd.f32 %v1603_v39, %v2419_v56  ;;  %v2090_v56 = vld [vmem:[#allocation2 + $0x1d0] sm:$0xff]  }
 0x43a   :  { %v1951_v55 = vpop.f32.mrf.mxu0 }
 0x43b   :  { %v1041_v57 = vmul.f32 1.442695, %v1028_v53  ;;  %vm1047_vm1 = vcmp.ne.f32.partialorder %v1028_v53, 0.0 }
 0x43c   :  { %v1030_v59 = vpop.f32.mrf.mxu0  ;;  %v1643_v8 = vsel %vm1047_vm1, 1.0, %v2158_v0  ;;  %1987 = vmatpush3.bf16.msra.mxu0 %v2087_v47 }
 0x43d   :  { %2107 = vpow2.f32 %v1041_v57  ;;  %1988 = vmatprep.subr.bf16.mxu0 %v2158_v0  ;;  %v636_v59 = vadd.f32 %v1603_v39, %v2421_v58  ;;  %v2092_v58 = vld [vmem:[#allocation2 + $0x240] sm:$0xff]  }
 0x43e   :  { %v2100_v60 = vpop.eup %2099  ;;  %v1952_v61 = vpop.f32.mrf.mxu0 }
 0x43f   :  { %v2102_v62 = vpop.eup %2101  ;;  %v1059_v1 = vmul.f32 %v2100_v60, %v1640_v63 }
 0x440   :  { %v1058_v13 = vmul.f32 %v2102_v62, %v1639_v4  ;;  %1989 = vmatpush3.bf16.msra.mxu0 %v2088_v38  ;;  %v1297_v52 = vpop.f32.mrf.mxu0  ;;  %v2091_v4 = vld [vmem:[#allocation2 + $0x248] sm:$0xff]  }
 0x441   :  { %v1065_v15 = vsel %vm1063_vm15, %v1059_v1, 0.0  ;;  %1990 = vmatprep.subr.bf16.mxu0 %v2158_v0 }
 0x442   :  { %v2104_v2 = vpop.eup %2103  ;;  %v1064_v3 = vsel %vm1063_vm15, %v1058_v13, 0.0  ;;  %v1977_v54 = vpop.f32.mrf.mxu0 }
 0x443   :  { %v1060_v14 = vmul.f32 %v2104_v2, %v1641_v5  ;;  %v1066_v19 = vadd.f32 %v1065_v15, %v1064_v3  ;;  %v2089_v2 = vld [vmem:[#allocation2 + $0x1d8] sm:$0xff]   ;;  %v2096_v15 = vld [vmem:[#allocation2 + $0x220] sm:$0xff]  }
 0x444   :  { %1991 = vmatpush3.bf16.msra.mxu0 %v2089_v2  ;;  %v2093_v5 = vld [vmem:[#allocation2 + $0x238] sm:$0xff]  }
 0x445   :  { %v1067_v18 = vsel %vm1063_vm15, %v1060_v14, 0.0  ;;  %1992 = vmatprep.subr.bf16.mxu0 %v2158_v0 }
 0x446   :  { %v2106_v16 = vpop.eup %2105  ;;  %v1068_v21 = vadd.f32 %v1067_v18, %v1066_v19 }
 0x447   :  { %v1061_v6 = vmul.f32 %v2106_v16, %v1642_v17  ;;  %v1655_v17 = vld [vmem:[%s2491_s2 + $0x7] ss:$0 sm:$0xff] }
 0x448   :  { %1993 = vmatpush3.bf16.msra.mxu0 %v2090_v56 }
 0x449   :  { %v1069_v20 = vsel %vm1063_vm15, %v1061_v6, 0.0 }
 0x44a   :  { %v2108_v7 = vpop.eup %2107  ;;  %v1070_v23 = vadd.f32 %v1069_v20, %v1068_v21  ;;  %v2097_v21 = vld [vmem:[#allocation2 + $0x218] sm:$0xff]  }
 0x44b   :  { %v1062_v22 = vmul.f32 %v2108_v7, %v1643_v8 }
 0x44d   :  { %v1071_v24 = vsel %vm1063_vm15, %v1062_v22, 0.0 }
 0x44e   :  { %v1072_v10 = vadd.f32 %v1071_v24, %v1070_v23  ;;  %v1656_v23 = vld [vmem:[%s2491_s2 + $0x8] ss:$0 sm:$0xff] }
 0x450   :  { %vm1073_vm2 = vcmp.eq.f32.partialorder %v1072_v10, 0.0 }
 0x451   :  { %v1644_v11 = vsel %vm1073_vm2, 1.0, %v2158_v0 }
 0x452   :  { %v1076_v12 = vadd.f32 %v1644_v11, %v1072_v10 }
 0x454   :  { %2109 = vrcp.f32 %v1076_v12 }
 0x461   :  { %v2110_v25 = vpop.eup %2109 }
 0x462   :  { %v1080_v26 = vmul.f32 %v2110_v25, %v1060_v14  ;;  %v1078_v27 = vmul.f32 %v2110_v25, %v1058_v13  ;;  %v1081_v29 = vmul.f32 %v2110_v25, %v1061_v6  ;;  %v1079_v30 = vmul.f32 %v2110_v25, %v1059_v1  ;;  %v2094_v13 = vld [vmem:[#allocation2 + $0x230] sm:$0xff]   ;;  %v2095_v14 = vld [vmem:[#allocation2 + $0x228] sm:$0xff]  }
 0x463   :  { %v1082_v32 = vmul.f32 %v2110_v25, %v1062_v22  ;;  %v2098_v22 = vld [vmem:[#allocation2 + $0x210] sm:$0xff]  }
 0x464   :  { %1095 = vperm.xlu1 %2026, %v1080_v26   ;;  %1085 = vperm.xlu0 %2025, %v1078_v27   ;;  %v1665_v27 = vld [vmem:[%s2491_s2 + $0x9] ss:$0 sm:$0xff] }
 0x468   :  { %1100 = vperm.xlu1 %2026, %v1081_v29   ;;  %1090 = vperm.xlu0 %2025, %v1079_v30  }
 0x46c   :  { %1105 = vperm.xlu0 %2025, %v1082_v32  }
 0x4df   :  { %v1096_v40 = vpop.permute.xlu1 %1095  ;;  %v1086_v41 = vpop.permute.xlu0 %1085 }
 0x4e0   :  { %v1108_v46 = vmul.f32 %v1086_v41, %v620_v42  ;;  %v1110_v53 = vmul.f32 %v1096_v40, %v628_v45 }
 0x4e3   :  { %v1091_v44 = vpop.permute.xlu0 %1090  ;;  %v1101_v49 = vpop.permute.xlu1 %1100 }
 0x4e4   :  { %v1109_v48 = vmul.f32 %v1091_v44, %v623_v43  ;;  %v1111_v60 = vmul.f32 %v1101_v49, %v631_v51 }
 0x4e6   :  { %v1113_v55 = vadd.f32 %v1109_v48, %v1108_v46 }
 0x4e7   :  { %v1106_v57 = vpop.permute.xlu0 %1105 }
 0x4e8   :  { %v1114_v61 = vadd.f32 %v1113_v55, %v1110_v53  ;;  %v1112_v63 = vmul.f32 %v1106_v57, %v636_v59 }
 0x4ea   :  { %v1115_v62 = vadd.f32 %v1114_v61, %v1111_v60 }
 0x4ec   :  { %v1116_v50 = vadd.f32 %v1115_v62, %v1112_v63 }
 0x4ee   :  { %v1135_v1 = vpack.c.bf16 %v1116_v50, %v1116_v50 }
 0x4f0   :  { %1970 = vmatmul.mubr.bf16.vlgmr.msra.gmra.mxu1 %v1135_v1 }
 0x4f1   :  { %2014 = vmatprep.mubr.msk.bf16.mxu1 %vm2159_vm0, %v2158_v0  ;;  %1999 = vmatpush3.bf16.msra.mxu1 %v2091_v4  ;;  %vm1561_vm0 = vcmask 57344  }
 0x4f2   :  { %2000 = vmatprep.subr.bf16.mxu1 %v2158_v0 }
 0x4f5   :  { %2001 = vmatpush3.bf16.msra.mxu1 %v2092_v58 }
 0x4f6   :  { %2002 = vmatprep.subr.bf16.mxu1 %v2158_v0 }
 0x4f9   :  { %2003 = vmatpush3.bf16.msra.mxu1 %v2093_v5 }
 0x4fa   :  { %2004 = vmatprep.subr.bf16.mxu1 %v2158_v0 }
 0x4fd   :  { %2005 = vmatpush3.bf16.msra.mxu1 %v2094_v13 }
 0x4fe   :  { %2006 = vmatprep.subr.bf16.mxu1 %v2158_v0 }
 0x501   :  { %2007 = vmatpush3.bf16.msra.mxu1 %v2095_v14 }
 0x502   :  { %2008 = vmatprep.subr.bf16.mxu1 %v2158_v0 }
 0x505   :  { %2009 = vmatpush3.bf16.msra.mxu1 %v2096_v15 }
 0x506   :  { %2010 = vmatprep.subr.bf16.mxu1 %v2158_v0 }
 0x509   :  { %2011 = vmatpush3.bf16.msra.mxu1 %v2097_v21 }
 0x50a   :  { %2012 = vmatprep.subr.bf16.mxu1 %v2158_v0 }
 0x50d   :  { %2013 = vmatpush3.bf16.msra.mxu1 %v2098_v22 }
 0x5b0   :  { %v1218_v16 = vpop.f32.mrf.mxu1 }
 0x5b1   :  { %v1298_v3 = vadd.f32 %v1297_v52, %v1218_v16 }
 0x5b2   :  { %v1971_v6 = vpop.f32.mrf.mxu1 }
 0x5b3   :  { %v1306_v18 = vadd.f32 %v1655_v17, %v1298_v3 }
 0x5b4   :  { %v1221_v19 = vpop.f32.mrf.mxu1 }
 0x5b5   :  { %v1307_v20 = vmax.f32 %v1306_v18, 0.0 }
 0x5b6   :  { %v1972_v7 = vpop.f32.mrf.mxu1 }
 0x5b7   :  { %v1324_v8 = vpack.c.bf16 %v1307_v20, %v1307_v20 }
 0x5b9   :  { %1995 = vmatmul.mubr.bf16.vlgmr.msra.gmra.mxu0 %v1324_v8 }
 0x679   :  { %v1412_v24 = vpop.f32.mrf.mxu0 }
 0x67a   :  { %v1413_v10 = vadd.f32 %v1656_v23, %v1412_v24 }
 0x67b   :  { %v1996_v11 = vpop.f32.mrf.mxu0 }
 0x67c   :  { %v1418_v12 = vmax.f32 %v1413_v10, 0.0 }
 0x67d   :  { %v1415_v9 = vpop.f32.mrf.mxu0 }
 0x67e   :  { %v1435_v25 = vpack.c.bf16 %v1418_v12, %v1418_v12 }
 0x67f   :  { %v1997_v26 = vpop.f32.mrf.mxu0 }
 0x680   :  { %2015 = vmatmul.mubr.bf16.vlgmr.msra.gmra.mxu1 %v1435_v25 }
 0x740   :  { %v1523_v28 = vpop.f32.mrf.mxu1 }
 0x741   :  { %v1524_v0 = vadd.f32 %v1665_v27, %v1523_v28 }
 0x742   :  { %v2016_v29 = vpop.f32.mrf.mxu1 }
 0x743   :  { %1529 = vxpose.xlu1.b32.start.end [1/1] (short) (narrow) %v1524_v0, 8 }
 0x744   :  { %v1526_v30 = vpop.f32.mrf.mxu1 }
 0x746   :  { %v2017_v31 = vpop.f32.mrf.mxu1 }
 0x7bf   :  { %v1545_v32 = vpop.trf.xlu1 }
 0x7c0   :  { %1562 = vst.msk [vmem:[#allocation5] sm:$0x1] %vm1561_vm0, %v1545_v32 }
 0x7c1   :  { %2142 = shalt.err (!%p2139_p9)
}
 0x7c2   :  { %1572 = dma.vmem_to_hbm [thread:$0]  %s1570_s26, 16, %s2492_s3, [#allocation4]  }
 0x7c3   :  { %2153 = dma.done.wait [#allocation4], 16  }
 0x7c4   :  { %2154 = vsyncadd [#allocation4], 4294967280 }
 0x7c5   :  { %1576 = vsyncpa [#allocation3], 1 }
 0x7c6   :  { %1577 = vsyncpa [#allocation4], 1 }

</bundles_post_ra>
